<compile_context>
chip_gen: v5e
topology: v5e:2x2
jax: 0.10.0
libtpu: 0.0.40
codegen_flags: <defaults>
</compile_context>

<pallas_src>
import functools

import jax
import jax.numpy as jnp
from jax.experimental import pallas as pl
from jax.experimental.pallas import tpu as pltpu


def rae_kernel(
    x_ref,          # (T*B, F)   f32   encoder input, time-major, flattened
    lens_ref,       # (B, 1)     int32 valid sequence lengths
    last_mask_ref,  # (B, 1)     f32   1.0 where lens == max(lens) else 0.0
    enc_wih_ref,    # (F, 3H)          fused (r|z|n) input weights
    enc_whh_ref,    # (H, 3H)          fused hidden weights
    enc_bi_ref,     # (1, 3H)          [bih_r+bhh_r | bih_z+bhh_z | bih_n]
    enc_bhn_ref,    # (1, H)           bhh_n
    enc_lw_ref,     # (H, C)
    enc_lb_ref,     # (1, C)
    dec_wih_ref,    # (C, 3H)
    dec_whh_ref,    # (H, 3H)
    dec_bi_ref,     # (1, 3H)
    dec_bhn_ref,    # (1, H)
    dec_lw_ref,     # (H, O)
    dec_lb_ref,     # (1, O)
    out_ref,        # (DIM*B, O) output, time-major flattened
    dec_h_ref,      # (B, H)     output, decoder final hidden
    gi_scratch,     # (T*B, 3H)  VMEM: precomputed encoder input projections
    hs_scratch,     # (DIM*B, H) VMEM: decoder hidden states (for deferred proj)
    *, T, B, H, DIM
):
    # ---- all encoder input projections in one batched matmul (off the
    # ---- serial recurrent chain) + combined input-side bias --------------
    gi_scratch[...] = (
        jnp.dot(x_ref[...], enc_wih_ref[...], preferred_element_type=jnp.float32)
        + enc_bi_ref[...]
    )

    lens = lens_ref[...]          # (B, 1)
    enc_whh = enc_whh_ref[...]
    enc_bhn = enc_bhn_ref[...]

    def gru_cell(gi, h, whh, bhn):
        # One fused hidden matmul per step; slice r/z/n lanes out of 3H.
        gh = jnp.dot(h, whh, preferred_element_type=jnp.float32)
        r = jax.nn.sigmoid(gi[:, 0:H] + gh[:, 0:H])
        z = jax.nn.sigmoid(gi[:, H:2 * H] + gh[:, H:2 * H])
        n = jnp.tanh(gi[:, 2 * H:3 * H] + r * (gh[:, 2 * H:3 * H] + bhn))
        return (1.0 - z) * n + z * h

    # ---------------- Encoder GRU (packed-sequence semantics) -------------
    h = jnp.zeros((B, H), jnp.float32)
    for t in range(T):                                  # fully unrolled
        gi_t = gi_scratch[t * B:(t + 1) * B, :]         # (B, 3H) static slice
        h_new = gru_cell(gi_t, h, enc_whh, enc_bhn)
        h = jnp.where(lens > t, h_new, h)               # freeze past seq end

    # pad_packed_sequence pads to max(lens); x[:, -1, :] is the GRU output at
    # t = max(lens)-1 for full-length sequences, zeros otherwise.
    last_out = last_mask_ref[...] * h

    # encoder Linear: hidden -> num_classes
    feat = (
        jnp.dot(last_out, enc_lw_ref[...], preferred_element_type=jnp.float32)
        + enc_lb_ref[...]
    )

    # ---------------- Decoder GRU (same feature fed each step) ------------
    # Loop-invariant input-side projection: compute once, reuse every step.
    dec_gi = (
        jnp.dot(feat, dec_wih_ref[...], preferred_element_type=jnp.float32)
        + dec_bi_ref[...]
    )
    dec_whh = dec_whh_ref[...]
    dec_bhn = dec_bhn_ref[...]

    # decoder initial hidden = encoder_hidden[:1]; with one layer that is h.
    for j in range(DIM):                                # fully unrolled
        h = gru_cell(dec_gi, h, dec_whh, dec_bhn)
        hs_scratch[j * B:(j + 1) * B, :] = h

    dec_h_ref[...] = h.astype(dec_h_ref.dtype)

    # Deferred output projection: one matmul + one store instead of DIM tiny ones.
    out_ref[...] = (
        jnp.dot(hs_scratch[...], dec_lw_ref[...], preferred_element_type=jnp.float32)
        + dec_lb_ref[...]
    ).astype(out_ref.dtype)


def rae_forward(x, dim, lens, params, hidden=None):
    """Mirror of RAE.forward. `hidden` is accepted but unused (the PyTorch
    encoder passes None to its GRU, so the provided hidden never matters)."""
    del hidden
    B, T, F = x.shape
    H = params["enc_whh"].shape[-1]
    C = params["enc_lw"].shape[-1]
    O = params["dec_lw"].shape[-1]

    # time-major, flattened to (T*B, F) for the single input-projection matmul
    x_flat = jnp.transpose(x, (1, 0, 2)).reshape(T * B, F).astype(jnp.float32)
    lens_i = lens.astype(jnp.int32)
    lens2d = lens_i.reshape(B, 1)
    # (lens == max(lens)) mask computed on the host/XLA side (keeps the
    # cross-lane reduce out of the kernel).
    last_mask = (lens_i == jnp.max(lens_i)).astype(jnp.float32).reshape(B, 1)

    def fuse_w(w):  # (3, In, H) -> (In, 3H), gate order (r, z, n)
        return jnp.concatenate([w[0], w[1], w[2]], axis=-1)

    def fuse_b(bih, bhh):
        # r, z use sigmoid(gi + gh): both biases can live on the input side.
        # n needs bhh_n inside r * (h @ W_hh_n + bhh_n), so it stays separate.
        b_comb = jnp.concatenate([bih[0] + bhh[0], bih[1] + bhh[1], bih[2]],
                                 axis=-1)                      # (1, 3H)
        return b_comb, bhh[2]                                  # (1, 3H), (1, H)

    enc_wih_f = fuse_w(params["enc_wih"])
    enc_whh_f = fuse_w(params["enc_whh"])
    enc_bi, enc_bhn = fuse_b(params["enc_bih"], params["enc_bhh"])
    dec_wih_f = fuse_w(params["dec_wih"])
    dec_whh_f = fuse_w(params["dec_whh"])
    dec_bi, dec_bhn = fuse_b(params["dec_bih"], params["dec_bhh"])

    vmem = pl.BlockSpec(memory_space=pltpu.MemorySpace.VMEM)
    ins = [
        x_flat, lens2d, last_mask,
        enc_wih_f, enc_whh_f, enc_bi, enc_bhn, params["enc_lw"], params["enc_lb"],
        dec_wih_f, dec_whh_f, dec_bi, dec_bhn, params["dec_lw"], params["dec_lb"],
    ]

    kernel = functools.partial(rae_kernel, T=T, B=B, H=H, DIM=dim)

    out_flat, dec_h = pl.pallas_call(
        kernel,
        out_shape=(
            jax.ShapeDtypeStruct((dim * B, O), jnp.float32),
            jax.ShapeDtypeStruct((B, H), jnp.float32),
        ),
        in_specs=[vmem] * len(ins),
        out_specs=(vmem, vmem),
        scratch_shapes=[
            pltpu.VMEM((T * B, 3 * H), jnp.float32),
            pltpu.VMEM((dim * B, H), jnp.float32),
        ],
    )(*ins)

    output = out_flat.reshape(dim, B, O).transpose(1, 0, 2)   # (B, dim, O), batch_first
    decoder_hidden = dec_h[None]                              # (1, B, H) == decoder_hidden[:1]
    return output, decoder_hidden


def init_params(key, F, H, C, O):
    """Deterministic init mimicking PyTorch's uniform(-1/sqrt(fan), 1/sqrt(fan)).
    Kept in PyTorch-like (3, In, H) stacked layout; fusion happens in the wrapper."""
    ks = jax.random.split(key, 12)
    kH = 1.0 / float(jnp.sqrt(jnp.float32(H)))

    def u(k, shape, bound):
        return jax.random.uniform(k, shape, jnp.float32, -bound, bound)

    return dict(
        enc_wih=u(ks[0], (3, F, H), kH),
        enc_whh=u(ks[1], (3, H, H), kH),
        enc_bih=u(ks[2], (3, 1, H), kH),
        enc_bhh=u(ks[3], (3, 1, H), kH),
        enc_lw=u(ks[4], (H, C), kH),
        enc_lb=u(ks[5], (1, C), kH),
        dec_wih=u(ks[6], (3, C, H), kH),
        dec_whh=u(ks[7], (3, H, H), kH),
        dec_bih=u(ks[8], (3, 1, H), kH),
        dec_bhh=u(ks[9], (3, 1, H), kH),
        dec_lw=u(ks[10], (H, O), kH),
        dec_lb=u(ks[11], (1, O), kH),
    )


def rae_reference(x, dim, lens, params):
    """Pure-JAX reference (unfused weights) for the exact same semantics."""
    B, T, _ = x.shape
    H = params["enc_whh"].shape[-1]

    def gru(x_t, h, wih, whh, bih, bhh):
        r = jax.nn.sigmoid(x_t @ wih[0] + bih[0] + h @ whh[0] + bhh[0])
        z = jax.nn.sigmoid(x_t @ wih[1] + bih[1] + h @ whh[1] + bhh[1])
        n = jnp.tanh(x_t @ wih[2] + bih[2] + r * (h @ whh[2] + bhh[2]))
        return (1.0 - z) * n + z * h

    h = jnp.zeros((B, H), jnp.float32)
    for t in range(T):
        h_new = gru(x[:, t, :], h, params["enc_wih"], params["enc_whh"],
                    params["enc_bih"], params["enc_bhh"])
        h = jnp.where((lens > t)[:, None], h_new, h)
    last = jnp.where((lens == jnp.max(lens))[:, None], h, 0.0)
    feat = last @ params["enc_lw"] + params["enc_lb"]
    outs = []
    for _ in range(dim):
        h = gru(feat, h, params["dec_wih"], params["dec_whh"],
                params["dec_bih"], params["dec_bhh"])
        outs.append(h @ params["dec_lw"] + params["dec_lb"])
    return jnp.stack(outs, axis=1), h[None]


if __name__ == "__main__":
    # small shapes: batch=4, seq=8, input_size=8, hidden=32, num_classes=16,
    # output_size=8, num_layers=1, decoder dim=6
    B, T, F, H, C, O, DIM = 4, 8, 8, 32, 16, 8, 6

    key = jax.random.PRNGKey(0)
    kx, kp = jax.random.split(key)
    x = jax.random.normal(kx, (B, T, F), jnp.float32)
    lens = jnp.array([8, 7, 5, 3], jnp.int32)   # sorted desc (pack_padded req.)
    params = init_params(kp, F, H, C, O)

    out, dec_h = rae_forward(x, DIM, lens, params)
    out = jax.block_until_ready(out)
    dec_h = jax.block_until_ready(dec_h)

    ref_out, ref_h = rae_reference(x, DIM, lens, params)
    assert out.shape == (B, DIM, O) and dec_h.shape == (1, B, H)
    assert jnp.allclose(out, ref_out, atol=2e-4, rtol=2e-4)
    assert jnp.allclose(dec_h, ref_h, atol=2e-4, rtol=2e-4)

    print("KERNEL_OK")
</pallas_src>

<mosaic_0001>
module attributes {stable_mosaic.version = 11 : i64} {
  func.func @rae_kernel(%arg0: memref<32x8xf32, #tpu.memory_space<vmem>>, %arg1: memref<4x1xi32, #tpu.memory_space<vmem>>, %arg2: memref<4x1xf32, #tpu.memory_space<vmem>>, %arg3: memref<8x96xf32, #tpu.memory_space<vmem>>, %arg4: memref<32x96xf32, #tpu.memory_space<vmem>>, %arg5: memref<1x96xf32, #tpu.memory_space<vmem>>, %arg6: memref<1x32xf32, #tpu.memory_space<vmem>>, %arg7: memref<32x16xf32, #tpu.memory_space<vmem>>, %arg8: memref<1x16xf32, #tpu.memory_space<vmem>>, %arg9: memref<16x96xf32, #tpu.memory_space<vmem>>, %arg10: memref<32x96xf32, #tpu.memory_space<vmem>>, %arg11: memref<1x96xf32, #tpu.memory_space<vmem>>, %arg12: memref<1x32xf32, #tpu.memory_space<vmem>>, %arg13: memref<32x8xf32, #tpu.memory_space<vmem>>, %arg14: memref<1x8xf32, #tpu.memory_space<vmem>>, %arg15: memref<24x8xf32, #tpu.memory_space<vmem>>, %arg16: memref<4x32xf32, #tpu.memory_space<vmem>>, %arg17: memref<32x96xf32, #tpu.memory_space<vmem>>, %arg18: memref<24x32xf32, #tpu.memory_space<vmem>>) attributes {dimension_semantics = [], scalar_prefetch = 0 : i64, scratch_operands = 2 : i64, tpu.core_type = #tpu.core_type<tc>} {
    %c0 = arith.constant 0 : index
    %c0_0 = arith.constant 0 : index
    %0 = vector.load %arg0[%c0, %c0_0] : memref<32x8xf32, #tpu.memory_space<vmem>>, vector<32x8xf32>
    %c0_1 = arith.constant 0 : index
    %c0_2 = arith.constant 0 : index
    %1 = vector.load %arg3[%c0_1, %c0_2] : memref<8x96xf32, #tpu.memory_space<vmem>>, vector<8x96xf32>
    %cst = arith.constant dense<0.000000e+00> : vector<32x96xf32>
    %2 = tpu.matmul %0, %1, %cst {dimension_numbers = #tpu.dot_dimension_numbers<[1], [0], [0], [1], [0, 0, 1, 1], [], []>} : vector<32x8xf32>, vector<8x96xf32>, vector<32x96xf32> -> vector<32x96xf32>
    %c0_3 = arith.constant 0 : index
    %c0_4 = arith.constant 0 : index
    %3 = vector.load %arg5[%c0_3, %c0_4] : memref<1x96xf32, #tpu.memory_space<vmem>>, vector<1x96xf32>
    %4 = vector.broadcast %3 : vector<1x96xf32> to vector<32x96xf32>
    %5 = arith.addf %2, %4 : vector<32x96xf32>
    %c0_5 = arith.constant 0 : index
    %c0_6 = arith.constant 0 : index
    %6 = vector.load %arg17[%c0_5, %c0_6] : memref<32x96xf32, #tpu.memory_space<vmem>>, vector<32x96xf32>
    tpu.vector_store %arg17[%c0_5, %c0_6], %5 {strides = array<i32>} : memref<32x96xf32, #tpu.memory_space<vmem>>, vector<32x96xf32>,
    %c0_7 = arith.constant 0 : index
    %c0_8 = arith.constant 0 : index
    %7 = vector.load %arg1[%c0_7, %c0_8] : memref<4x1xi32, #tpu.memory_space<vmem>>, vector<4x1xi32>
    %c0_9 = arith.constant 0 : index
    %c0_10 = arith.constant 0 : index
    %8 = vector.load %arg4[%c0_9, %c0_10] : memref<32x96xf32, #tpu.memory_space<vmem>>, vector<32x96xf32>
    %c0_11 = arith.constant 0 : index
    %c0_12 = arith.constant 0 : index
    %9 = vector.load %arg6[%c0_11, %c0_12] : memref<1x32xf32, #tpu.memory_space<vmem>>, vector<1x32xf32>
    %cst_13 = arith.constant 0.000000e+00 : f32
    %10 = vector.broadcast %cst_13 : f32 to vector<4x32xf32>
    %c0_14 = arith.constant 0 : index
    %c0_15 = arith.constant 0 : index
    %11 = vector.load %arg17[%c0_14, %c0_15] : memref<32x96xf32, #tpu.memory_space<vmem>>, vector<4x96xf32>
    %cst_16 = arith.constant dense<0.000000e+00> : vector<4x96xf32>
    %12 = tpu.matmul %10, %8, %cst_16 {dimension_numbers = #tpu.dot_dimension_numbers<[1], [0], [0], [1], [0, 0, 1, 1], [], []>} : vector<4x32xf32>, vector<32x96xf32>, vector<4x96xf32> -> vector<4x96xf32>
    %13 = vector.extract_strided_slice %11 {offsets = [0, 0], sizes = [4, 32], strides = [1, 1]} : vector<4x96xf32> to vector<4x32xf32>
    %14 = vector.extract_strided_slice %12 {offsets = [0, 0], sizes = [4, 32], strides = [1, 1]} : vector<4x96xf32> to vector<4x32xf32>
    %15 = arith.addf %13, %14 : vector<4x32xf32>
    %16 = arith.negf %15 : vector<4x32xf32>
    %17 = math.exp %16 : vector<4x32xf32>
    %cst_17 = arith.constant 1.000000e+00 : f32
    %18 = vector.broadcast %cst_17 : f32 to vector<4x32xf32>
    %19 = arith.addf %18, %17 : vector<4x32xf32>
    %20 = arith.divf %18, %19 : vector<4x32xf32>
    %21 = vector.extract_strided_slice %11 {offsets = [0, 32], sizes = [4, 32], strides = [1, 1]} : vector<4x96xf32> to vector<4x32xf32>
    %22 = vector.extract_strided_slice %12 {offsets = [0, 32], sizes = [4, 32], strides = [1, 1]} : vector<4x96xf32> to vector<4x32xf32>
    %23 = arith.addf %21, %22 : vector<4x32xf32>
    %24 = arith.negf %23 : vector<4x32xf32>
    %25 = math.exp %24 : vector<4x32xf32>
    %cst_18 = arith.constant 1.000000e+00 : f32
    %26 = vector.broadcast %cst_18 : f32 to vector<4x32xf32>
    %27 = arith.addf %26, %25 : vector<4x32xf32>
    %28 = arith.divf %26, %27 : vector<4x32xf32>
    %29 = vector.extract_strided_slice %11 {offsets = [0, 64], sizes = [4, 32], strides = [1, 1]} : vector<4x96xf32> to vector<4x32xf32>
    %30 = vector.extract_strided_slice %12 {offsets = [0, 64], sizes = [4, 32], strides = [1, 1]} : vector<4x96xf32> to vector<4x32xf32>
    %31 = vector.broadcast %9 : vector<1x32xf32> to vector<4x32xf32>
    %32 = arith.addf %30, %31 : vector<4x32xf32>
    %33 = arith.mulf %20, %32 : vector<4x32xf32>
    %34 = arith.addf %29, %33 : vector<4x32xf32>
    %35 = math.tanh %34 : vector<4x32xf32>
    %cst_19 = arith.constant 1.000000e+00 : f32
    %36 = vector.broadcast %cst_19 : f32 to vector<4x32xf32>
    %37 = arith.subf %36, %28 : vector<4x32xf32>
    %38 = arith.mulf %37, %35 : vector<4x32xf32>
    %39 = arith.mulf %28, %10 : vector<4x32xf32>
    %40 = arith.addf %38, %39 : vector<4x32xf32>
    %c0_i32 = arith.constant 0 : i32
    %41 = vector.broadcast %c0_i32 : i32 to vector<4x1xi32>
    %42 = arith.cmpi sgt, %7, %41 : vector<4x1xi32>
    %43 = vector.shape_cast %42 : vector<4x1xi1> to vector<4x1xi1>
    %44 = vector.broadcast %43 : vector<4x1xi1> to vector<4x32xi1>
    %45 = arith.select %44, %40, %10 : vector<4x32xi1>, vector<4x32xf32>
    %c4 = arith.constant 4 : index
    %c0_20 = arith.constant 0 : index
    %46 = vector.load %arg17[%c4, %c0_20] : memref<32x96xf32, #tpu.memory_space<vmem>>, vector<4x96xf32>
    %cst_21 = arith.constant dense<0.000000e+00> : vector<4x96xf32>
    %47 = tpu.matmul %45, %8, %cst_21 {dimension_numbers = #tpu.dot_dimension_numbers<[1], [0], [0], [1], [0, 0, 1, 1], [], []>} : vector<4x32xf32>, vector<32x96xf32>, vector<4x96xf32> -> vector<4x96xf32>
    %48 = vector.extract_strided_slice %46 {offsets = [0, 0], sizes = [4, 32], strides = [1, 1]} : vector<4x96xf32> to vector<4x32xf32>
    %49 = vector.extract_strided_slice %47 {offsets = [0, 0], sizes = [4, 32], strides = [1, 1]} : vector<4x96xf32> to vector<4x32xf32>
    %50 = arith.addf %48, %49 : vector<4x32xf32>
    %51 = arith.negf %50 : vector<4x32xf32>
    %52 = math.exp %51 : vector<4x32xf32>
    %cst_22 = arith.constant 1.000000e+00 : f32
    %53 = vector.broadcast %cst_22 : f32 to vector<4x32xf32>
    %54 = arith.addf %53, %52 : vector<4x32xf32>
    %55 = arith.divf %53, %54 : vector<4x32xf32>
    %56 = vector.extract_strided_slice %46 {offsets = [0, 32], sizes = [4, 32], strides = [1, 1]} : vector<4x96xf32> to vector<4x32xf32>
    %57 = vector.extract_strided_slice %47 {offsets = [0, 32], sizes = [4, 32], strides = [1, 1]} : vector<4x96xf32> to vector<4x32xf32>
    %58 = arith.addf %56, %57 : vector<4x32xf32>
    %59 = arith.negf %58 : vector<4x32xf32>
    %60 = math.exp %59 : vector<4x32xf32>
    %cst_23 = arith.constant 1.000000e+00 : f32
    %61 = vector.broadcast %cst_23 : f32 to vector<4x32xf32>
    %62 = arith.addf %61, %60 : vector<4x32xf32>
    %63 = arith.divf %61, %62 : vector<4x32xf32>
    %64 = vector.extract_strided_slice %46 {offsets = [0, 64], sizes = [4, 32], strides = [1, 1]} : vector<4x96xf32> to vector<4x32xf32>
    %65 = vector.extract_strided_slice %47 {offsets = [0, 64], sizes = [4, 32], strides = [1, 1]} : vector<4x96xf32> to vector<4x32xf32>
    %66 = vector.broadcast %9 : vector<1x32xf32> to vector<4x32xf32>
    %67 = arith.addf %65, %66 : vector<4x32xf32>
    %68 = arith.mulf %55, %67 : vector<4x32xf32>
    %69 = arith.addf %64, %68 : vector<4x32xf32>
    %70 = math.tanh %69 : vector<4x32xf32>
    %cst_24 = arith.constant 1.000000e+00 : f32
    %71 = vector.broadcast %cst_24 : f32 to vector<4x32xf32>
    %72 = arith.subf %71, %63 : vector<4x32xf32>
    %73 = arith.mulf %72, %70 : vector<4x32xf32>
    %74 = arith.mulf %63, %45 : vector<4x32xf32>
    %75 = arith.addf %73, %74 : vector<4x32xf32>
    %c1_i32 = arith.constant 1 : i32
    %76 = vector.broadcast %c1_i32 : i32 to vector<4x1xi32>
    %77 = arith.cmpi sgt, %7, %76 : vector<4x1xi32>
    %78 = vector.shape_cast %77 : vector<4x1xi1> to vector<4x1xi1>
    %79 = vector.broadcast %78 : vector<4x1xi1> to vector<4x32xi1>
    %80 = arith.select %79, %75, %45 : vector<4x32xi1>, vector<4x32xf32>
    %c8 = arith.constant 8 : index
    %c0_25 = arith.constant 0 : index
    %81 = vector.load %arg17[%c8, %c0_25] : memref<32x96xf32, #tpu.memory_space<vmem>>, vector<4x96xf32>
    %cst_26 = arith.constant dense<0.000000e+00> : vector<4x96xf32>
    %82 = tpu.matmul %80, %8, %cst_26 {dimension_numbers = #tpu.dot_dimension_numbers<[1], [0], [0], [1], [0, 0, 1, 1], [], []>} : vector<4x32xf32>, vector<32x96xf32>, vector<4x96xf32> -> vector<4x96xf32>
    %83 = vector.extract_strided_slice %81 {offsets = [0, 0], sizes = [4, 32], strides = [1, 1]} : vector<4x96xf32> to vector<4x32xf32>
    %84 = vector.extract_strided_slice %82 {offsets = [0, 0], sizes = [4, 32], strides = [1, 1]} : vector<4x96xf32> to vector<4x32xf32>
    %85 = arith.addf %83, %84 : vector<4x32xf32>
    %86 = arith.negf %85 : vector<4x32xf32>
    %87 = math.exp %86 : vector<4x32xf32>
    %cst_27 = arith.constant 1.000000e+00 : f32
    %88 = vector.broadcast %cst_27 : f32 to vector<4x32xf32>
    %89 = arith.addf %88, %87 : vector<4x32xf32>
    %90 = arith.divf %88, %89 : vector<4x32xf32>
    %91 = vector.extract_strided_slice %81 {offsets = [0, 32], sizes = [4, 32], strides = [1, 1]} : vector<4x96xf32> to vector<4x32xf32>
    %92 = vector.extract_strided_slice %82 {offsets = [0, 32], sizes = [4, 32], strides = [1, 1]} : vector<4x96xf32> to vector<4x32xf32>
    %93 = arith.addf %91, %92 : vector<4x32xf32>
    %94 = arith.negf %93 : vector<4x32xf32>
    %95 = math.exp %94 : vector<4x32xf32>
    %cst_28 = arith.constant 1.000000e+00 : f32
    %96 = vector.broadcast %cst_28 : f32 to vector<4x32xf32>
    %97 = arith.addf %96, %95 : vector<4x32xf32>
    %98 = arith.divf %96, %97 : vector<4x32xf32>
    %99 = vector.extract_strided_slice %81 {offsets = [0, 64], sizes = [4, 32], strides = [1, 1]} : vector<4x96xf32> to vector<4x32xf32>
    %100 = vector.extract_strided_slice %82 {offsets = [0, 64], sizes = [4, 32], strides = [1, 1]} : vector<4x96xf32> to vector<4x32xf32>
    %101 = vector.broadcast %9 : vector<1x32xf32> to vector<4x32xf32>
    %102 = arith.addf %100, %101 : vector<4x32xf32>
    %103 = arith.mulf %90, %102 : vector<4x32xf32>
    %104 = arith.addf %99, %103 : vector<4x32xf32>
    %105 = math.tanh %104 : vector<4x32xf32>
    %cst_29 = arith.constant 1.000000e+00 : f32
    %106 = vector.broadcast %cst_29 : f32 to vector<4x32xf32>
    %107 = arith.subf %106, %98 : vector<4x32xf32>
    %108 = arith.mulf %107, %105 : vector<4x32xf32>
    %109 = arith.mulf %98, %80 : vector<4x32xf32>
    %110 = arith.addf %108, %109 : vector<4x32xf32>
    %c2_i32 = arith.constant 2 : i32
    %111 = vector.broadcast %c2_i32 : i32 to vector<4x1xi32>
    %112 = arith.cmpi sgt, %7, %111 : vector<4x1xi32>
    %113 = vector.shape_cast %112 : vector<4x1xi1> to vector<4x1xi1>
    %114 = vector.broadcast %113 : vector<4x1xi1> to vector<4x32xi1>
    %115 = arith.select %114, %110, %80 : vector<4x32xi1>, vector<4x32xf32>
    %c12 = arith.constant 12 : index
    %c0_30 = arith.constant 0 : index
    %116 = vector.load %arg17[%c12, %c0_30] : memref<32x96xf32, #tpu.memory_space<vmem>>, vector<4x96xf32>
    %cst_31 = arith.constant dense<0.000000e+00> : vector<4x96xf32>
    %117 = tpu.matmul %115, %8, %cst_31 {dimension_numbers = #tpu.dot_dimension_numbers<[1], [0], [0], [1], [0, 0, 1, 1], [], []>} : vector<4x32xf32>, vector<32x96xf32>, vector<4x96xf32> -> vector<4x96xf32>
    %118 = vector.extract_strided_slice %116 {offsets = [0, 0], sizes = [4, 32], strides = [1, 1]} : vector<4x96xf32> to vector<4x32xf32>
    %119 = vector.extract_strided_slice %117 {offsets = [0, 0], sizes = [4, 32], strides = [1, 1]} : vector<4x96xf32> to vector<4x32xf32>
    %120 = arith.addf %118, %119 : vector<4x32xf32>
    %121 = arith.negf %120 : vector<4x32xf32>
    %122 = math.exp %121 : vector<4x32xf32>
    %cst_32 = arith.constant 1.000000e+00 : f32
    %123 = vector.broadcast %cst_32 : f32 to vector<4x32xf32>
    %124 = arith.addf %123, %122 : vector<4x32xf32>
    %125 = arith.divf %123, %124 : vector<4x32xf32>
    %126 = vector.extract_strided_slice %116 {offsets = [0, 32], sizes = [4, 32], strides = [1, 1]} : vector<4x96xf32> to vector<4x32xf32>
    %127 = vector.extract_strided_slice %117 {offsets = [0, 32], sizes = [4, 32], strides = [1, 1]} : vector<4x96xf32> to vector<4x32xf32>
    %128 = arith.addf %126, %127 : vector<4x32xf32>
    %129 = arith.negf %128 : vector<4x32xf32>
    %130 = math.exp %129 : vector<4x32xf32>
    %cst_33 = arith.constant 1.000000e+00 : f32
    %131 = vector.broadcast %cst_33 : f32 to vector<4x32xf32>
    %132 = arith.addf %131, %130 : vector<4x32xf32>
    %133 = arith.divf %131, %132 : vector<4x32xf32>
    %134 = vector.extract_strided_slice %116 {offsets = [0, 64], sizes = [4, 32], strides = [1, 1]} : vector<4x96xf32> to vector<4x32xf32>
    %135 = vector.extract_strided_slice %117 {offsets = [0, 64], sizes = [4, 32], strides = [1, 1]} : vector<4x96xf32> to vector<4x32xf32>
    %136 = vector.broadcast %9 : vector<1x32xf32> to vector<4x32xf32>
    %137 = arith.addf %135, %136 : vector<4x32xf32>
    %138 = arith.mulf %125, %137 : vector<4x32xf32>
    %139 = arith.addf %134, %138 : vector<4x32xf32>
    %140 = math.tanh %139 : vector<4x32xf32>
    %cst_34 = arith.constant 1.000000e+00 : f32
    %141 = vector.broadcast %cst_34 : f32 to vector<4x32xf32>
    %142 = arith.subf %141, %133 : vector<4x32xf32>
    %143 = arith.mulf %142, %140 : vector<4x32xf32>
    %144 = arith.mulf %133, %115 : vector<4x32xf32>
    %145 = arith.addf %143, %144 : vector<4x32xf32>
    %c3_i32 = arith.constant 3 : i32
    %146 = vector.broadcast %c3_i32 : i32 to vector<4x1xi32>
    %147 = arith.cmpi sgt, %7, %146 : vector<4x1xi32>
    %148 = vector.shape_cast %147 : vector<4x1xi1> to vector<4x1xi1>
    %149 = vector.broadcast %148 : vector<4x1xi1> to vector<4x32xi1>
    %150 = arith.select %149, %145, %115 : vector<4x32xi1>, vector<4x32xf32>
    %c16 = arith.constant 16 : index
    %c0_35 = arith.constant 0 : index
    %151 = vector.load %arg17[%c16, %c0_35] : memref<32x96xf32, #tpu.memory_space<vmem>>, vector<4x96xf32>
    %cst_36 = arith.constant dense<0.000000e+00> : vector<4x96xf32>
    %152 = tpu.matmul %150, %8, %cst_36 {dimension_numbers = #tpu.dot_dimension_numbers<[1], [0], [0], [1], [0, 0, 1, 1], [], []>} : vector<4x32xf32>, vector<32x96xf32>, vector<4x96xf32> -> vector<4x96xf32>
    %153 = vector.extract_strided_slice %151 {offsets = [0, 0], sizes = [4, 32], strides = [1, 1]} : vector<4x96xf32> to vector<4x32xf32>
    %154 = vector.extract_strided_slice %152 {offsets = [0, 0], sizes = [4, 32], strides = [1, 1]} : vector<4x96xf32> to vector<4x32xf32>
    %155 = arith.addf %153, %154 : vector<4x32xf32>
    %156 = arith.negf %155 : vector<4x32xf32>
    %157 = math.exp %156 : vector<4x32xf32>
    %cst_37 = arith.constant 1.000000e+00 : f32
    %158 = vector.broadcast %cst_37 : f32 to vector<4x32xf32>
    %159 = arith.addf %158, %157 : vector<4x32xf32>
    %160 = arith.divf %158, %159 : vector<4x32xf32>
    %161 = vector.extract_strided_slice %151 {offsets = [0, 32], sizes = [4, 32], strides = [1, 1]} : vector<4x96xf32> to vector<4x32xf32>
    %162 = vector.extract_strided_slice %152 {offsets = [0, 32], sizes = [4, 32], strides = [1, 1]} : vector<4x96xf32> to vector<4x32xf32>
    %163 = arith.addf %161, %162 : vector<4x32xf32>
    %164 = arith.negf %163 : vector<4x32xf32>
    %165 = math.exp %164 : vector<4x32xf32>
    %cst_38 = arith.constant 1.000000e+00 : f32
    %166 = vector.broadcast %cst_38 : f32 to vector<4x32xf32>
    %167 = arith.addf %166, %165 : vector<4x32xf32>
    %168 = arith.divf %166, %167 : vector<4x32xf32>
    %169 = vector.extract_strided_slice %151 {offsets = [0, 64], sizes = [4, 32], strides = [1, 1]} : vector<4x96xf32> to vector<4x32xf32>
    %170 = vector.extract_strided_slice %152 {offsets = [0, 64], sizes = [4, 32], strides = [1, 1]} : vector<4x96xf32> to vector<4x32xf32>
    %171 = vector.broadcast %9 : vector<1x32xf32> to vector<4x32xf32>
    %172 = arith.addf %170, %171 : vector<4x32xf32>
    %173 = arith.mulf %160, %172 : vector<4x32xf32>
    %174 = arith.addf %169, %173 : vector<4x32xf32>
    %175 = math.tanh %174 : vector<4x32xf32>
    %cst_39 = arith.constant 1.000000e+00 : f32
    %176 = vector.broadcast %cst_39 : f32 to vector<4x32xf32>
    %177 = arith.subf %176, %168 : vector<4x32xf32>
    %178 = arith.mulf %177, %175 : vector<4x32xf32>
    %179 = arith.mulf %168, %150 : vector<4x32xf32>
    %180 = arith.addf %178, %179 : vector<4x32xf32>
    %c4_i32 = arith.constant 4 : i32
    %181 = vector.broadcast %c4_i32 : i32 to vector<4x1xi32>
    %182 = arith.cmpi sgt, %7, %181 : vector<4x1xi32>
    %183 = vector.shape_cast %182 : vector<4x1xi1> to vector<4x1xi1>
    %184 = vector.broadcast %183 : vector<4x1xi1> to vector<4x32xi1>
    %185 = arith.select %184, %180, %150 : vector<4x32xi1>, vector<4x32xf32>
    %c20 = arith.constant 20 : index
    %c0_40 = arith.constant 0 : index
    %186 = vector.load %arg17[%c20, %c0_40] : memref<32x96xf32, #tpu.memory_space<vmem>>, vector<4x96xf32>
    %cst_41 = arith.constant dense<0.000000e+00> : vector<4x96xf32>
    %187 = tpu.matmul %185, %8, %cst_41 {dimension_numbers = #tpu.dot_dimension_numbers<[1], [0], [0], [1], [0, 0, 1, 1], [], []>} : vector<4x32xf32>, vector<32x96xf32>, vector<4x96xf32> -> vector<4x96xf32>
    %188 = vector.extract_strided_slice %186 {offsets = [0, 0], sizes = [4, 32], strides = [1, 1]} : vector<4x96xf32> to vector<4x32xf32>
    %189 = vector.extract_strided_slice %187 {offsets = [0, 0], sizes = [4, 32], strides = [1, 1]} : vector<4x96xf32> to vector<4x32xf32>
    %190 = arith.addf %188, %189 : vector<4x32xf32>
    %191 = arith.negf %190 : vector<4x32xf32>
    %192 = math.exp %191 : vector<4x32xf32>
    %cst_42 = arith.constant 1.000000e+00 : f32
    %193 = vector.broadcast %cst_42 : f32 to vector<4x32xf32>
    %194 = arith.addf %193, %192 : vector<4x32xf32>
    %195 = arith.divf %193, %194 : vector<4x32xf32>
    %196 = vector.extract_strided_slice %186 {offsets = [0, 32], sizes = [4, 32], strides = [1, 1]} : vector<4x96xf32> to vector<4x32xf32>
    %197 = vector.extract_strided_slice %187 {offsets = [0, 32], sizes = [4, 32], strides = [1, 1]} : vector<4x96xf32> to vector<4x32xf32>
    %198 = arith.addf %196, %197 : vector<4x32xf32>
    %199 = arith.negf %198 : vector<4x32xf32>
    %200 = math.exp %199 : vector<4x32xf32>
    %cst_43 = arith.constant 1.000000e+00 : f32
    %201 = vector.broadcast %cst_43 : f32 to vector<4x32xf32>
    %202 = arith.addf %201, %200 : vector<4x32xf32>
    %203 = arith.divf %201, %202 : vector<4x32xf32>
    %204 = vector.extract_strided_slice %186 {offsets = [0, 64], sizes = [4, 32], strides = [1, 1]} : vector<4x96xf32> to vector<4x32xf32>
    %205 = vector.extract_strided_slice %187 {offsets = [0, 64], sizes = [4, 32], strides = [1, 1]} : vector<4x96xf32> to vector<4x32xf32>
    %206 = vector.broadcast %9 : vector<1x32xf32> to vector<4x32xf32>
    %207 = arith.addf %205, %206 : vector<4x32xf32>
    %208 = arith.mulf %195, %207 : vector<4x32xf32>
    %209 = arith.addf %204, %208 : vector<4x32xf32>
    %210 = math.tanh %209 : vector<4x32xf32>
    %cst_44 = arith.constant 1.000000e+00 : f32
    %211 = vector.broadcast %cst_44 : f32 to vector<4x32xf32>
    %212 = arith.subf %211, %203 : vector<4x32xf32>
    %213 = arith.mulf %212, %210 : vector<4x32xf32>
    %214 = arith.mulf %203, %185 : vector<4x32xf32>
    %215 = arith.addf %213, %214 : vector<4x32xf32>
    %c5_i32 = arith.constant 5 : i32
    %216 = vector.broadcast %c5_i32 : i32 to vector<4x1xi32>
    %217 = arith.cmpi sgt, %7, %216 : vector<4x1xi32>
    %218 = vector.shape_cast %217 : vector<4x1xi1> to vector<4x1xi1>
    %219 = vector.broadcast %218 : vector<4x1xi1> to vector<4x32xi1>
    %220 = arith.select %219, %215, %185 : vector<4x32xi1>, vector<4x32xf32>
    %c24 = arith.constant 24 : index
    %c0_45 = arith.constant 0 : index
    %221 = vector.load %arg17[%c24, %c0_45] : memref<32x96xf32, #tpu.memory_space<vmem>>, vector<4x96xf32>
    %cst_46 = arith.constant dense<0.000000e+00> : vector<4x96xf32>
    %222 = tpu.matmul %220, %8, %cst_46 {dimension_numbers = #tpu.dot_dimension_numbers<[1], [0], [0], [1], [0, 0, 1, 1], [], []>} : vector<4x32xf32>, vector<32x96xf32>, vector<4x96xf32> -> vector<4x96xf32>
    %223 = vector.extract_strided_slice %221 {offsets = [0, 0], sizes = [4, 32], strides = [1, 1]} : vector<4x96xf32> to vector<4x32xf32>
    %224 = vector.extract_strided_slice %222 {offsets = [0, 0], sizes = [4, 32], strides = [1, 1]} : vector<4x96xf32> to vector<4x32xf32>
    %225 = arith.addf %223, %224 : vector<4x32xf32>
    %226 = arith.negf %225 : vector<4x32xf32>
    %227 = math.exp %226 : vector<4x32xf32>
    %cst_47 = arith.constant 1.000000e+00 : f32
    %228 = vector.broadcast %cst_47 : f32 to vector<4x32xf32>
    %229 = arith.addf %228, %227 : vector<4x32xf32>
    %230 = arith.divf %228, %229 : vector<4x32xf32>
    %231 = vector.extract_strided_slice %221 {offsets = [0, 32], sizes = [4, 32], strides = [1, 1]} : vector<4x96xf32> to vector<4x32xf32>
    %232 = vector.extract_strided_slice %222 {offsets = [0, 32], sizes = [4, 32], strides = [1, 1]} : vector<4x96xf32> to vector<4x32xf32>
    %233 = arith.addf %231, %232 : vector<4x32xf32>
    %234 = arith.negf %233 : vector<4x32xf32>
    %235 = math.exp %234 : vector<4x32xf32>
    %cst_48 = arith.constant 1.000000e+00 : f32
    %236 = vector.broadcast %cst_48 : f32 to vector<4x32xf32>
    %237 = arith.addf %236, %235 : vector<4x32xf32>
    %238 = arith.divf %236, %237 : vector<4x32xf32>
    %239 = vector.extract_strided_slice %221 {offsets = [0, 64], sizes = [4, 32], strides = [1, 1]} : vector<4x96xf32> to vector<4x32xf32>
    %240 = vector.extract_strided_slice %222 {offsets = [0, 64], sizes = [4, 32], strides = [1, 1]} : vector<4x96xf32> to vector<4x32xf32>
    %241 = vector.broadcast %9 : vector<1x32xf32> to vector<4x32xf32>
    %242 = arith.addf %240, %241 : vector<4x32xf32>
    %243 = arith.mulf %230, %242 : vector<4x32xf32>
    %244 = arith.addf %239, %243 : vector<4x32xf32>
    %245 = math.tanh %244 : vector<4x32xf32>
    %cst_49 = arith.constant 1.000000e+00 : f32
    %246 = vector.broadcast %cst_49 : f32 to vector<4x32xf32>
    %247 = arith.subf %246, %238 : vector<4x32xf32>
    %248 = arith.mulf %247, %245 : vector<4x32xf32>
    %249 = arith.mulf %238, %220 : vector<4x32xf32>
    %250 = arith.addf %248, %249 : vector<4x32xf32>
    %c6_i32 = arith.constant 6 : i32
    %251 = vector.broadcast %c6_i32 : i32 to vector<4x1xi32>
    %252 = arith.cmpi sgt, %7, %251 : vector<4x1xi32>
    %253 = vector.shape_cast %252 : vector<4x1xi1> to vector<4x1xi1>
    %254 = vector.broadcast %253 : vector<4x1xi1> to vector<4x32xi1>
    %255 = arith.select %254, %250, %220 : vector<4x32xi1>, vector<4x32xf32>
    %c28 = arith.constant 28 : index
    %c0_50 = arith.constant 0 : index
    %256 = vector.load %arg17[%c28, %c0_50] : memref<32x96xf32, #tpu.memory_space<vmem>>, vector<4x96xf32>
    %cst_51 = arith.constant dense<0.000000e+00> : vector<4x96xf32>
    %257 = tpu.matmul %255, %8, %cst_51 {dimension_numbers = #tpu.dot_dimension_numbers<[1], [0], [0], [1], [0, 0, 1, 1], [], []>} : vector<4x32xf32>, vector<32x96xf32>, vector<4x96xf32> -> vector<4x96xf32>
    %258 = vector.extract_strided_slice %256 {offsets = [0, 0], sizes = [4, 32], strides = [1, 1]} : vector<4x96xf32> to vector<4x32xf32>
    %259 = vector.extract_strided_slice %257 {offsets = [0, 0], sizes = [4, 32], strides = [1, 1]} : vector<4x96xf32> to vector<4x32xf32>
    %260 = arith.addf %258, %259 : vector<4x32xf32>
    %261 = arith.negf %260 : vector<4x32xf32>
    %262 = math.exp %261 : vector<4x32xf32>
    %cst_52 = arith.constant 1.000000e+00 : f32
    %263 = vector.broadcast %cst_52 : f32 to vector<4x32xf32>
    %264 = arith.addf %263, %262 : vector<4x32xf32>
    %265 = arith.divf %263, %264 : vector<4x32xf32>
    %266 = vector.extract_strided_slice %256 {offsets = [0, 32], sizes = [4, 32], strides = [1, 1]} : vector<4x96xf32> to vector<4x32xf32>
    %267 = vector.extract_strided_slice %257 {offsets = [0, 32], sizes = [4, 32], strides = [1, 1]} : vector<4x96xf32> to vector<4x32xf32>
    %268 = arith.addf %266, %267 : vector<4x32xf32>
    %269 = arith.negf %268 : vector<4x32xf32>
    %270 = math.exp %269 : vector<4x32xf32>
    %cst_53 = arith.constant 1.000000e+00 : f32
    %271 = vector.broadcast %cst_53 : f32 to vector<4x32xf32>
    %272 = arith.addf %271, %270 : vector<4x32xf32>
    %273 = arith.divf %271, %272 : vector<4x32xf32>
    %274 = vector.extract_strided_slice %256 {offsets = [0, 64], sizes = [4, 32], strides = [1, 1]} : vector<4x96xf32> to vector<4x32xf32>
    %275 = vector.extract_strided_slice %257 {offsets = [0, 64], sizes = [4, 32], strides = [1, 1]} : vector<4x96xf32> to vector<4x32xf32>
    %276 = vector.broadcast %9 : vector<1x32xf32> to vector<4x32xf32>
    %277 = arith.addf %275, %276 : vector<4x32xf32>
    %278 = arith.mulf %265, %277 : vector<4x32xf32>
    %279 = arith.addf %274, %278 : vector<4x32xf32>
    %280 = math.tanh %279 : vector<4x32xf32>
    %cst_54 = arith.constant 1.000000e+00 : f32
    %281 = vector.broadcast %cst_54 : f32 to vector<4x32xf32>
    %282 = arith.subf %281, %273 : vector<4x32xf32>
    %283 = arith.mulf %282, %280 : vector<4x32xf32>
    %284 = arith.mulf %273, %255 : vector<4x32xf32>
    %285 = arith.addf %283, %284 : vector<4x32xf32>
    %c7_i32 = arith.constant 7 : i32
    %286 = vector.broadcast %c7_i32 : i32 to vector<4x1xi32>
    %287 = arith.cmpi sgt, %7, %286 : vector<4x1xi32>
    %288 = vector.shape_cast %287 : vector<4x1xi1> to vector<4x1xi1>
    %289 = vector.broadcast %288 : vector<4x1xi1> to vector<4x32xi1>
    %290 = arith.select %289, %285, %255 : vector<4x32xi1>, vector<4x32xf32>
    %c0_55 = arith.constant 0 : index
    %c0_56 = arith.constant 0 : index
    %291 = vector.load %arg2[%c0_55, %c0_56] : memref<4x1xf32, #tpu.memory_space<vmem>>, vector<4x1xf32>
    %292 = vector.broadcast %291 : vector<4x1xf32> to vector<4x32xf32>
    %293 = arith.mulf %292, %290 : vector<4x32xf32>
    %c0_57 = arith.constant 0 : index
    %c0_58 = arith.constant 0 : index
    %294 = vector.load %arg7[%c0_57, %c0_58] : memref<32x16xf32, #tpu.memory_space<vmem>>, vector<32x16xf32>
    %cst_59 = arith.constant dense<0.000000e+00> : vector<4x16xf32>
    %295 = tpu.matmul %293, %294, %cst_59 {dimension_numbers = #tpu.dot_dimension_numbers<[1], [0], [0], [1], [0, 0, 1, 1], [], []>} : vector<4x32xf32>, vector<32x16xf32>, vector<4x16xf32> -> vector<4x16xf32>
    %c0_60 = arith.constant 0 : index
    %c0_61 = arith.constant 0 : index
    %296 = vector.load %arg8[%c0_60, %c0_61] : memref<1x16xf32, #tpu.memory_space<vmem>>, vector<1x16xf32>
    %297 = vector.broadcast %296 : vector<1x16xf32> to vector<4x16xf32>
    %298 = arith.addf %295, %297 : vector<4x16xf32>
    %c0_62 = arith.constant 0 : index
    %c0_63 = arith.constant 0 : index
    %299 = vector.load %arg9[%c0_62, %c0_63] : memref<16x96xf32, #tpu.memory_space<vmem>>, vector<16x96xf32>
    %cst_64 = arith.constant dense<0.000000e+00> : vector<4x96xf32>
    %300 = tpu.matmul %298, %299, %cst_64 {dimension_numbers = #tpu.dot_dimension_numbers<[1], [0], [0], [1], [0, 0, 1, 1], [], []>} : vector<4x16xf32>, vector<16x96xf32>, vector<4x96xf32> -> vector<4x96xf32>
    %c0_65 = arith.constant 0 : index
    %c0_66 = arith.constant 0 : index
    %301 = vector.load %arg11[%c0_65, %c0_66] : memref<1x96xf32, #tpu.memory_space<vmem>>, vector<1x96xf32>
    %302 = vector.broadcast %301 : vector<1x96xf32> to vector<4x96xf32>
    %303 = arith.addf %300, %302 : vector<4x96xf32>
    %c0_67 = arith.constant 0 : index
    %c0_68 = arith.constant 0 : index
    %304 = vector.load %arg10[%c0_67, %c0_68] : memref<32x96xf32, #tpu.memory_space<vmem>>, vector<32x96xf32>
    %c0_69 = arith.constant 0 : index
    %c0_70 = arith.constant 0 : index
    %305 = vector.load %arg12[%c0_69, %c0_70] : memref<1x32xf32, #tpu.memory_space<vmem>>, vector<1x32xf32>
    %cst_71 = arith.constant dense<0.000000e+00> : vector<4x96xf32>
    %306 = tpu.matmul %290, %304, %cst_71 {dimension_numbers = #tpu.dot_dimension_numbers<[1], [0], [0], [1], [0, 0, 1, 1], [], []>} : vector<4x32xf32>, vector<32x96xf32>, vector<4x96xf32> -> vector<4x96xf32>
    %307 = vector.extract_strided_slice %303 {offsets = [0, 0], sizes = [4, 32], strides = [1, 1]} : vector<4x96xf32> to vector<4x32xf32>
    %308 = vector.extract_strided_slice %306 {offsets = [0, 0], sizes = [4, 32], strides = [1, 1]} : vector<4x96xf32> to vector<4x32xf32>
    %309 = arith.addf %307, %308 : vector<4x32xf32>
    %310 = arith.negf %309 : vector<4x32xf32>
    %311 = math.exp %310 : vector<4x32xf32>
    %cst_72 = arith.constant 1.000000e+00 : f32
    %312 = vector.broadcast %cst_72 : f32 to vector<4x32xf32>
    %313 = arith.addf %312, %311 : vector<4x32xf32>
    %314 = arith.divf %312, %313 : vector<4x32xf32>
    %315 = vector.extract_strided_slice %303 {offsets = [0, 32], sizes = [4, 32], strides = [1, 1]} : vector<4x96xf32> to vector<4x32xf32>
    %316 = vector.extract_strided_slice %306 {offsets = [0, 32], sizes = [4, 32], strides = [1, 1]} : vector<4x96xf32> to vector<4x32xf32>
    %317 = arith.addf %315, %316 : vector<4x32xf32>
    %318 = arith.negf %317 : vector<4x32xf32>
    %319 = math.exp %318 : vector<4x32xf32>
    %cst_73 = arith.constant 1.000000e+00 : f32
    %320 = vector.broadcast %cst_73 : f32 to vector<4x32xf32>
    %321 = arith.addf %320, %319 : vector<4x32xf32>
    %322 = arith.divf %320, %321 : vector<4x32xf32>
    %323 = vector.extract_strided_slice %303 {offsets = [0, 64], sizes = [4, 32], strides = [1, 1]} : vector<4x96xf32> to vector<4x32xf32>
    %324 = vector.extract_strided_slice %306 {offsets = [0, 64], sizes = [4, 32], strides = [1, 1]} : vector<4x96xf32> to vector<4x32xf32>
    %325 = vector.broadcast %305 : vector<1x32xf32> to vector<4x32xf32>
    %326 = arith.addf %324, %325 : vector<4x32xf32>
    %327 = arith.mulf %314, %326 : vector<4x32xf32>
    %328 = arith.addf %323, %327 : vector<4x32xf32>
    %329 = math.tanh %328 : vector<4x32xf32>
    %cst_74 = arith.constant 1.000000e+00 : f32
    %330 = vector.broadcast %cst_74 : f32 to vector<4x32xf32>
    %331 = arith.subf %330, %322 : vector<4x32xf32>
    %332 = arith.mulf %331, %329 : vector<4x32xf32>
    %333 = arith.mulf %322, %290 : vector<4x32xf32>
    %334 = arith.addf %332, %333 : vector<4x32xf32>
    %c0_75 = arith.constant 0 : index
    %c0_76 = arith.constant 0 : index
    %335 = vector.load %arg18[%c0_75, %c0_76] : memref<24x32xf32, #tpu.memory_space<vmem>>, vector<4x32xf32>
    tpu.vector_store %arg18[%c0_75, %c0_76], %334 {strides = array<i32>} : memref<24x32xf32, #tpu.memory_space<vmem>>, vector<4x32xf32>,
    %cst_77 = arith.constant dense<0.000000e+00> : vector<4x96xf32>
    %336 = tpu.matmul %334, %304, %cst_77 {dimension_numbers = #tpu.dot_dimension_numbers<[1], [0], [0], [1], [0, 0, 1, 1], [], []>} : vector<4x32xf32>, vector<32x96xf32>, vector<4x96xf32> -> vector<4x96xf32>
    %337 = vector.extract_strided_slice %303 {offsets = [0, 0], sizes = [4, 32], strides = [1, 1]} : vector<4x96xf32> to vector<4x32xf32>
    %338 = vector.extract_strided_slice %336 {offsets = [0, 0], sizes = [4, 32], strides = [1, 1]} : vector<4x96xf32> to vector<4x32xf32>
    %339 = arith.addf %337, %338 : vector<4x32xf32>
    %340 = arith.negf %339 : vector<4x32xf32>
    %341 = math.exp %340 : vector<4x32xf32>
    %cst_78 = arith.constant 1.000000e+00 : f32
    %342 = vector.broadcast %cst_78 : f32 to vector<4x32xf32>
    %343 = arith.addf %342, %341 : vector<4x32xf32>
    %344 = arith.divf %342, %343 : vector<4x32xf32>
    %345 = vector.extract_strided_slice %303 {offsets = [0, 32], sizes = [4, 32], strides = [1, 1]} : vector<4x96xf32> to vector<4x32xf32>
    %346 = vector.extract_strided_slice %336 {offsets = [0, 32], sizes = [4, 32], strides = [1, 1]} : vector<4x96xf32> to vector<4x32xf32>
    %347 = arith.addf %345, %346 : vector<4x32xf32>
    %348 = arith.negf %347 : vector<4x32xf32>
    %349 = math.exp %348 : vector<4x32xf32>
    %cst_79 = arith.constant 1.000000e+00 : f32
    %350 = vector.broadcast %cst_79 : f32 to vector<4x32xf32>
    %351 = arith.addf %350, %349 : vector<4x32xf32>
    %352 = arith.divf %350, %351 : vector<4x32xf32>
    %353 = vector.extract_strided_slice %303 {offsets = [0, 64], sizes = [4, 32], strides = [1, 1]} : vector<4x96xf32> to vector<4x32xf32>
    %354 = vector.extract_strided_slice %336 {offsets = [0, 64], sizes = [4, 32], strides = [1, 1]} : vector<4x96xf32> to vector<4x32xf32>
    %355 = vector.broadcast %305 : vector<1x32xf32> to vector<4x32xf32>
    %356 = arith.addf %354, %355 : vector<4x32xf32>
    %357 = arith.mulf %344, %356 : vector<4x32xf32>
    %358 = arith.addf %353, %357 : vector<4x32xf32>
    %359 = math.tanh %358 : vector<4x32xf32>
    %cst_80 = arith.constant 1.000000e+00 : f32
    %360 = vector.broadcast %cst_80 : f32 to vector<4x32xf32>
    %361 = arith.subf %360, %352 : vector<4x32xf32>
    %362 = arith.mulf %361, %359 : vector<4x32xf32>
    %363 = arith.mulf %352, %334 : vector<4x32xf32>
    %364 = arith.addf %362, %363 : vector<4x32xf32>
    %c4_81 = arith.constant 4 : index
    %c0_82 = arith.constant 0 : index
    %365 = vector.load %arg18[%c4_81, %c0_82] : memref<24x32xf32, #tpu.memory_space<vmem>>, vector<4x32xf32>
    tpu.vector_store %arg18[%c4_81, %c0_82], %364 {strides = array<i32>} : memref<24x32xf32, #tpu.memory_space<vmem>>, vector<4x32xf32>,
    %cst_83 = arith.constant dense<0.000000e+00> : vector<4x96xf32>
    %366 = tpu.matmul %364, %304, %cst_83 {dimension_numbers = #tpu.dot_dimension_numbers<[1], [0], [0], [1], [0, 0, 1, 1], [], []>} : vector<4x32xf32>, vector<32x96xf32>, vector<4x96xf32> -> vector<4x96xf32>
    %367 = vector.extract_strided_slice %303 {offsets = [0, 0], sizes = [4, 32], strides = [1, 1]} : vector<4x96xf32> to vector<4x32xf32>
    %368 = vector.extract_strided_slice %366 {offsets = [0, 0], sizes = [4, 32], strides = [1, 1]} : vector<4x96xf32> to vector<4x32xf32>
    %369 = arith.addf %367, %368 : vector<4x32xf32>
    %370 = arith.negf %369 : vector<4x32xf32>
    %371 = math.exp %370 : vector<4x32xf32>
    %cst_84 = arith.constant 1.000000e+00 : f32
    %372 = vector.broadcast %cst_84 : f32 to vector<4x32xf32>
    %373 = arith.addf %372, %371 : vector<4x32xf32>
    %374 = arith.divf %372, %373 : vector<4x32xf32>
    %375 = vector.extract_strided_slice %303 {offsets = [0, 32], sizes = [4, 32], strides = [1, 1]} : vector<4x96xf32> to vector<4x32xf32>
    %376 = vector.extract_strided_slice %366 {offsets = [0, 32], sizes = [4, 32], strides = [1, 1]} : vector<4x96xf32> to vector<4x32xf32>
    %377 = arith.addf %375, %376 : vector<4x32xf32>
    %378 = arith.negf %377 : vector<4x32xf32>
    %379 = math.exp %378 : vector<4x32xf32>
    %cst_85 = arith.constant 1.000000e+00 : f32
    %380 = vector.broadcast %cst_85 : f32 to vector<4x32xf32>
    %381 = arith.addf %380, %379 : vector<4x32xf32>
    %382 = arith.divf %380, %381 : vector<4x32xf32>
    %383 = vector.extract_strided_slice %303 {offsets = [0, 64], sizes = [4, 32], strides = [1, 1]} : vector<4x96xf32> to vector<4x32xf32>
    %384 = vector.extract_strided_slice %366 {offsets = [0, 64], sizes = [4, 32], strides = [1, 1]} : vector<4x96xf32> to vector<4x32xf32>
    %385 = vector.broadcast %305 : vector<1x32xf32> to vector<4x32xf32>
    %386 = arith.addf %384, %385 : vector<4x32xf32>
    %387 = arith.mulf %374, %386 : vector<4x32xf32>
    %388 = arith.addf %383, %387 : vector<4x32xf32>
    %389 = math.tanh %388 : vector<4x32xf32>
    %cst_86 = arith.constant 1.000000e+00 : f32
    %390 = vector.broadcast %cst_86 : f32 to vector<4x32xf32>
    %391 = arith.subf %390, %382 : vector<4x32xf32>
    %392 = arith.mulf %391, %389 : vector<4x32xf32>
    %393 = arith.mulf %382, %364 : vector<4x32xf32>
    %394 = arith.addf %392, %393 : vector<4x32xf32>
    %c8_87 = arith.constant 8 : index
    %c0_88 = arith.constant 0 : index
    %395 = vector.load %arg18[%c8_87, %c0_88] : memref<24x32xf32, #tpu.memory_space<vmem>>, vector<4x32xf32>
    tpu.vector_store %arg18[%c8_87, %c0_88], %394 {strides = array<i32>} : memref<24x32xf32, #tpu.memory_space<vmem>>, vector<4x32xf32>,
    %cst_89 = arith.constant dense<0.000000e+00> : vector<4x96xf32>
    %396 = tpu.matmul %394, %304, %cst_89 {dimension_numbers = #tpu.dot_dimension_numbers<[1], [0], [0], [1], [0, 0, 1, 1], [], []>} : vector<4x32xf32>, vector<32x96xf32>, vector<4x96xf32> -> vector<4x96xf32>
    %397 = vector.extract_strided_slice %303 {offsets = [0, 0], sizes = [4, 32], strides = [1, 1]} : vector<4x96xf32> to vector<4x32xf32>
    %398 = vector.extract_strided_slice %396 {offsets = [0, 0], sizes = [4, 32], strides = [1, 1]} : vector<4x96xf32> to vector<4x32xf32>
    %399 = arith.addf %397, %398 : vector<4x32xf32>
    %400 = arith.negf %399 : vector<4x32xf32>
    %401 = math.exp %400 : vector<4x32xf32>
    %cst_90 = arith.constant 1.000000e+00 : f32
    %402 = vector.broadcast %cst_90 : f32 to vector<4x32xf32>
    %403 = arith.addf %402, %401 : vector<4x32xf32>
    %404 = arith.divf %402, %403 : vector<4x32xf32>
    %405 = vector.extract_strided_slice %303 {offsets = [0, 32], sizes = [4, 32], strides = [1, 1]} : vector<4x96xf32> to vector<4x32xf32>
    %406 = vector.extract_strided_slice %396 {offsets = [0, 32], sizes = [4, 32], strides = [1, 1]} : vector<4x96xf32> to vector<4x32xf32>
    %407 = arith.addf %405, %406 : vector<4x32xf32>
    %408 = arith.negf %407 : vector<4x32xf32>
    %409 = math.exp %408 : vector<4x32xf32>
    %cst_91 = arith.constant 1.000000e+00 : f32
    %410 = vector.broadcast %cst_91 : f32 to vector<4x32xf32>
    %411 = arith.addf %410, %409 : vector<4x32xf32>
    %412 = arith.divf %410, %411 : vector<4x32xf32>
    %413 = vector.extract_strided_slice %303 {offsets = [0, 64], sizes = [4, 32], strides = [1, 1]} : vector<4x96xf32> to vector<4x32xf32>
    %414 = vector.extract_strided_slice %396 {offsets = [0, 64], sizes = [4, 32], strides = [1, 1]} : vector<4x96xf32> to vector<4x32xf32>
    %415 = vector.broadcast %305 : vector<1x32xf32> to vector<4x32xf32>
    %416 = arith.addf %414, %415 : vector<4x32xf32>
    %417 = arith.mulf %404, %416 : vector<4x32xf32>
    %418 = arith.addf %413, %417 : vector<4x32xf32>
    %419 = math.tanh %418 : vector<4x32xf32>
    %cst_92 = arith.constant 1.000000e+00 : f32
    %420 = vector.broadcast %cst_92 : f32 to vector<4x32xf32>
    %421 = arith.subf %420, %412 : vector<4x32xf32>
    %422 = arith.mulf %421, %419 : vector<4x32xf32>
    %423 = arith.mulf %412, %394 : vector<4x32xf32>
    %424 = arith.addf %422, %423 : vector<4x32xf32>
    %c12_93 = arith.constant 12 : index
    %c0_94 = arith.constant 0 : index
    %425 = vector.load %arg18[%c12_93, %c0_94] : memref<24x32xf32, #tpu.memory_space<vmem>>, vector<4x32xf32>
    tpu.vector_store %arg18[%c12_93, %c0_94], %424 {strides = array<i32>} : memref<24x32xf32, #tpu.memory_space<vmem>>, vector<4x32xf32>,
    %cst_95 = arith.constant dense<0.000000e+00> : vector<4x96xf32>
    %426 = tpu.matmul %424, %304, %cst_95 {dimension_numbers = #tpu.dot_dimension_numbers<[1], [0], [0], [1], [0, 0, 1, 1], [], []>} : vector<4x32xf32>, vector<32x96xf32>, vector<4x96xf32> -> vector<4x96xf32>
    %427 = vector.extract_strided_slice %303 {offsets = [0, 0], sizes = [4, 32], strides = [1, 1]} : vector<4x96xf32> to vector<4x32xf32>
    %428 = vector.extract_strided_slice %426 {offsets = [0, 0], sizes = [4, 32], strides = [1, 1]} : vector<4x96xf32> to vector<4x32xf32>
    %429 = arith.addf %427, %428 : vector<4x32xf32>
    %430 = arith.negf %429 : vector<4x32xf32>
    %431 = math.exp %430 : vector<4x32xf32>
    %cst_96 = arith.constant 1.000000e+00 : f32
    %432 = vector.broadcast %cst_96 : f32 to vector<4x32xf32>
    %433 = arith.addf %432, %431 : vector<4x32xf32>
    %434 = arith.divf %432, %433 : vector<4x32xf32>
    %435 = vector.extract_strided_slice %303 {offsets = [0, 32], sizes = [4, 32], strides = [1, 1]} : vector<4x96xf32> to vector<4x32xf32>
    %436 = vector.extract_strided_slice %426 {offsets = [0, 32], sizes = [4, 32], strides = [1, 1]} : vector<4x96xf32> to vector<4x32xf32>
    %437 = arith.addf %435, %436 : vector<4x32xf32>
    %438 = arith.negf %437 : vector<4x32xf32>
    %439 = math.exp %438 : vector<4x32xf32>
    %cst_97 = arith.constant 1.000000e+00 : f32
    %440 = vector.broadcast %cst_97 : f32 to vector<4x32xf32>
    %441 = arith.addf %440, %439 : vector<4x32xf32>
    %442 = arith.divf %440, %441 : vector<4x32xf32>
    %443 = vector.extract_strided_slice %303 {offsets = [0, 64], sizes = [4, 32], strides = [1, 1]} : vector<4x96xf32> to vector<4x32xf32>
    %444 = vector.extract_strided_slice %426 {offsets = [0, 64], sizes = [4, 32], strides = [1, 1]} : vector<4x96xf32> to vector<4x32xf32>
    %445 = vector.broadcast %305 : vector<1x32xf32> to vector<4x32xf32>
    %446 = arith.addf %444, %445 : vector<4x32xf32>
    %447 = arith.mulf %434, %446 : vector<4x32xf32>
    %448 = arith.addf %443, %447 : vector<4x32xf32>
    %449 = math.tanh %448 : vector<4x32xf32>
    %cst_98 = arith.constant 1.000000e+00 : f32
    %450 = vector.broadcast %cst_98 : f32 to vector<4x32xf32>
    %451 = arith.subf %450, %442 : vector<4x32xf32>
    %452 = arith.mulf %451, %449 : vector<4x32xf32>
    %453 = arith.mulf %442, %424 : vector<4x32xf32>
    %454 = arith.addf %452, %453 : vector<4x32xf32>
    %c16_99 = arith.constant 16 : index
    %c0_100 = arith.constant 0 : index
    %455 = vector.load %arg18[%c16_99, %c0_100] : memref<24x32xf32, #tpu.memory_space<vmem>>, vector<4x32xf32>
    tpu.vector_store %arg18[%c16_99, %c0_100], %454 {strides = array<i32>} : memref<24x32xf32, #tpu.memory_space<vmem>>, vector<4x32xf32>,
    %cst_101 = arith.constant dense<0.000000e+00> : vector<4x96xf32>
    %456 = tpu.matmul %454, %304, %cst_101 {dimension_numbers = #tpu.dot_dimension_numbers<[1], [0], [0], [1], [0, 0, 1, 1], [], []>} : vector<4x32xf32>, vector<32x96xf32>, vector<4x96xf32> -> vector<4x96xf32>
    %457 = vector.extract_strided_slice %303 {offsets = [0, 0], sizes = [4, 32], strides = [1, 1]} : vector<4x96xf32> to vector<4x32xf32>
    %458 = vector.extract_strided_slice %456 {offsets = [0, 0], sizes = [4, 32], strides = [1, 1]} : vector<4x96xf32> to vector<4x32xf32>
    %459 = arith.addf %457, %458 : vector<4x32xf32>
    %460 = arith.negf %459 : vector<4x32xf32>
    %461 = math.exp %460 : vector<4x32xf32>
    %cst_102 = arith.constant 1.000000e+00 : f32
    %462 = vector.broadcast %cst_102 : f32 to vector<4x32xf32>
    %463 = arith.addf %462, %461 : vector<4x32xf32>
    %464 = arith.divf %462, %463 : vector<4x32xf32>
    %465 = vector.extract_strided_slice %303 {offsets = [0, 32], sizes = [4, 32], strides = [1, 1]} : vector<4x96xf32> to vector<4x32xf32>
    %466 = vector.extract_strided_slice %456 {offsets = [0, 32], sizes = [4, 32], strides = [1, 1]} : vector<4x96xf32> to vector<4x32xf32>
    %467 = arith.addf %465, %466 : vector<4x32xf32>
    %468 = arith.negf %467 : vector<4x32xf32>
    %469 = math.exp %468 : vector<4x32xf32>
    %cst_103 = arith.constant 1.000000e+00 : f32
    %470 = vector.broadcast %cst_103 : f32 to vector<4x32xf32>
    %471 = arith.addf %470, %469 : vector<4x32xf32>
    %472 = arith.divf %470, %471 : vector<4x32xf32>
    %473 = vector.extract_strided_slice %303 {offsets = [0, 64], sizes = [4, 32], strides = [1, 1]} : vector<4x96xf32> to vector<4x32xf32>
    %474 = vector.extract_strided_slice %456 {offsets = [0, 64], sizes = [4, 32], strides = [1, 1]} : vector<4x96xf32> to vector<4x32xf32>
    %475 = vector.broadcast %305 : vector<1x32xf32> to vector<4x32xf32>
    %476 = arith.addf %474, %475 : vector<4x32xf32>
    %477 = arith.mulf %464, %476 : vector<4x32xf32>
    %478 = arith.addf %473, %477 : vector<4x32xf32>
    %479 = math.tanh %478 : vector<4x32xf32>
    %cst_104 = arith.constant 1.000000e+00 : f32
    %480 = vector.broadcast %cst_104 : f32 to vector<4x32xf32>
    %481 = arith.subf %480, %472 : vector<4x32xf32>
    %482 = arith.mulf %481, %479 : vector<4x32xf32>
    %483 = arith.mulf %472, %454 : vector<4x32xf32>
    %484 = arith.addf %482, %483 : vector<4x32xf32>
    %c20_105 = arith.constant 20 : index
    %c0_106 = arith.constant 0 : index
    %485 = vector.load %arg18[%c20_105, %c0_106] : memref<24x32xf32, #tpu.memory_space<vmem>>, vector<4x32xf32>
    tpu.vector_store %arg18[%c20_105, %c0_106], %484 {strides = array<i32>} : memref<24x32xf32, #tpu.memory_space<vmem>>, vector<4x32xf32>,
    %c0_107 = arith.constant 0 : index
    %c0_108 = arith.constant 0 : index
    %486 = vector.load %arg16[%c0_107, %c0_108] : memref<4x32xf32, #tpu.memory_space<vmem>>, vector<4x32xf32>
    tpu.vector_store %arg16[%c0_107, %c0_108], %484 {strides = array<i32>} : memref<4x32xf32, #tpu.memory_space<vmem>>, vector<4x32xf32>,
    %c0_109 = arith.constant 0 : index
    %c0_110 = arith.constant 0 : index
    %487 = vector.load %arg18[%c0_109, %c0_110] : memref<24x32xf32, #tpu.memory_space<vmem>>, vector<24x32xf32>
    %c0_111 = arith.constant 0 : index
    %c0_112 = arith.constant 0 : index
    %488 = vector.load %arg13[%c0_111, %c0_112] : memref<32x8xf32, #tpu.memory_space<vmem>>, vector<32x8xf32>
    %cst_113 = arith.constant dense<0.000000e+00> : vector<24x8xf32>
    %489 = tpu.matmul %487, %488, %cst_113 {dimension_numbers = #tpu.dot_dimension_numbers<[1], [0], [0], [1], [0, 0, 1, 1], [], []>} : vector<24x32xf32>, vector<32x8xf32>, vector<24x8xf32> -> vector<24x8xf32>
    %c0_114 = arith.constant 0 : index
    %c0_115 = arith.constant 0 : index
    %490 = vector.load %arg14[%c0_114, %c0_115] : memref<1x8xf32, #tpu.memory_space<vmem>>, vector<1x8xf32>
    %491 = vector.broadcast %490 : vector<1x8xf32> to vector<24x8xf32>
    %492 = arith.addf %489, %491 : vector<24x8xf32>
    %c0_116 = arith.constant 0 : index
    %c0_117 = arith.constant 0 : index
    %493 = vector.load %arg15[%c0_116, %c0_117] : memref<24x8xf32, #tpu.memory_space<vmem>>, vector<24x8xf32>
    tpu.vector_store %arg15[%c0_116, %c0_117], %492 {strides = array<i32>} : memref<24x8xf32, #tpu.memory_space<vmem>>, vector<24x8xf32>,
    return
  }
}

</mosaic_0001>

<bundles_post_ra>
// kernel: tpu_custom_call.1
= control target key start
LH: loop header
LB: loop body
LE: loop exit
PB: predicated region body
PF: predicated region fallthrough
CT: control target
= control target key end

     0   :  { %s1824_s0 = inlined_call_operand.vmem [shape: f32[32,8], index: 0, kind: input, shape index: {}]   ;;  %s1825_s1 = inlined_call_operand.vmem [shape: s32[4,1], index: 1, kind: input, shape index: {}]   ;;  %s1826_s2 = inlined_call_operand.vmem [shape: f32[4,1], index: 2, kind: input, shape index: {}]   ;;  %s1827_s3 = inlined_call_operand.vmem [shape: f32[8,96], index: 3, kind: input, shape index: {}]   ;;  %s1828_s4 = inlined_call_operand.vmem [shape: f32[32,96], index: 4, kind: input, shape index: {}]   ;;  %s1829_s5 = inlined_call_operand.vmem [shape: f32[1,96], index: 5, kind: input, shape index: {}]   ;;  %s1830_s6 = inlined_call_operand.vmem [shape: f32[1,32], index: 6, kind: input, shape index: {}]   ;;  %s1831_s7 = inlined_call_operand.vmem [shape: f32[32,16], index: 7, kind: input, shape index: {}]   ;;  %s1832_s8 = inlined_call_operand.vmem [shape: f32[1,16], index: 8, kind: input, shape index: {}]   ;;  %s1833_s9 = inlined_call_operand.vmem [shape: f32[16,96], index: 9, kind: input, shape index: {}]   ;;  %s1834_s10 = inlined_call_operand.vmem [shape: f32[32,96], index: 10, kind: input, shape index: {}]   ;;  %s1835_s11 = inlined_call_operand.vmem [shape: f32[1,96], index: 11, kind: input, shape index: {}]   ;;  %s1836_s12 = inlined_call_operand.vmem [shape: f32[1,32], index: 12, kind: input, shape index: {}]   ;;  %s1837_s13 = inlined_call_operand.vmem [shape: f32[32,8], index: 13, kind: input, shape index: {}]   ;;  %s1838_s14 = inlined_call_operand.vmem [shape: f32[1,8], index: 14, kind: input, shape index: {}]   ;;  %s1839_s15 = inlined_call_operand.vmem [shape: f32[24,8], index: 15, kind: output, shape index: {0}]   ;;  %s1840_s16 = inlined_call_operand.hbm [shape: f32[4,32], index: 16, kind: output, shape index: {1}]  }
   0x1   :  { %1842 = sst [smem:[#allocation7_spill]] %s1824_s0 }
   0x2   :  { %v57_v0 = vld [vmem:[%s1827_s3] sm:$0xff]  ;;  %s1843_s25 = sld [smem:[#allocation7_spill]]  ;;  %vm62_vm0 = vcmask 64512   ;;  %v1523_v3 = vld [vmem:[%s1828_s4 + $0x18] sm:$0xff]  ;;  %v1530_v4 = vld [vmem:[%s1828_s4 + $0x10] sm:$0xff]  ;;  %s1421_s20 = smov 64  }
   0x3   :  { %90 = vmatpush.msra.mxu0 %v57_v0  ;;  %1295 = vmatpush.msra.mxu1 %v57_v0  ;;  %v1305_v5 = vld [vmem:[%s1830_s6] ss:$0 sm:$0xff]  ;;  %v1539_v6 = vld [vmem:[%s1828_s4 + $0x8] sm:$0xff] }
   0x4   :  { %1296 = vmatpush.msra.mxu2 %v57_v0  ;;  %162 = vrot.lane.b32.xlu0 %v1305_v5, %s1421_s20 }
   0x5   :  { %132 = vmatpush.msrb.mxu1 %v1523_v3  ;;  %283 = vmatpush.msra.mxu3 %v1523_v3 }
   0x6   :  { %210 = vmatpush.msrb.mxu2 %v1523_v3 }
   0x7   :  { %133 = vmatpush.msrb.mxu1 %v1530_v4 }
   0x8   :  { %v53_v1 = vld [vmem:[%s1843_s25] sm:$0xff]  ;;  %v55_v2 = vld [vmem:[%s1843_s25 + $0x10] sm:$0xff] }
   0x9   :  { %1259 = vmatmul.msk.f32.vlgmr.msra.gmra.mxu0 %vm62_vm0, %v53_v1  ;;  %1261 = vmatmul.msk.f32.vlgmr.msra.gmra.mxu1 %vm62_vm0, %v55_v2 }
   0xa   :  { %22 = vsyncpa [#allocation5], 0  ;;  %v1548_v7 = vld [vmem:[%s1828_s4] sm:$0xff]  ;;  %211 = vmatpush.msrb.mxu2 %v1530_v4  ;;  %134 = vmatpush.msrb.mxu1 %v1539_v6  ;;  %v1422_v8 = vmov 0.0   ;;  %vm104_vm1 = vcmask 785408   ;;  %v1423_v35 = vmov 0  }
   0xb   :  { %284 = vmatpush.msra.mxu3 %v1530_v4  ;;  %v1573_v9 = vld [vmem:[%s1829_s5] ss:$0 sm:$0xff]  ;;  %1302 = vset.pattern.permute.xlu2 %v1423_v35  ;;  %s1424_s24 = smov 96   ;;  %v56_v40 = vld [vmem:[%s1843_s25 + $0x18] sm:$0xff]  ;;  %vm116_vm8 = vcmask 261120   ;;  %s1248_s27 = sshll.u32 %s1840_s16, 4  ;;  %s1249_s27 = int_to_ptr.hbm [resolvable:$true] %s1248_s27 }
   0xc   :  { %212 = vmatpush.msrb.mxu2 %v1539_v6  ;;  %135 = vmatpush.msrb.mxu1 %v1548_v7  ;;  %v1587_v34 = vld [vmem:[%s1825_s1] sm:$0xf] }
   0xd   :  { %285 = vmatpush.msra.mxu3 %v1539_v6  ;;  %vm185_vm6 = vcmp.gt.s32.totalorder %v1587_v34, 0  ;;  %1303 = vset.pattern.permute.xlu0 %v1423_v35  ;;  %vm258_vm9 = vcmp.gt.s32.totalorder %v1587_v34, 1  ;;  %vm331_vm10 = vcmp.gt.s32.totalorder %v1587_v34, 2 }
   0xe   :  { %213 = vmatpush.msrb.mxu2 %v1548_v7  ;;  %356 = vmatpush.msra.mxu1 %v1523_v3  ;;  %v186_v36 = vsel %vm185_vm6, 1, %v1423_v35  ;;  %v259_v58 = vsel %vm258_vm9, 1, %v1423_v35  ;;  %v332_v60 = vsel %vm331_vm10, 1, %v1423_v35  ;;  %vm404_vm6 = vcmp.gt.s32.totalorder %v1587_v34, 3 }
   0xf   :  { %286 = vmatpush.msra.mxu3 %v1548_v7  ;;  %1304 = vset.pattern.permute.xlu1 %v1423_v35 }
  0x10   :  { %357 = vmatpush.msra.mxu1 %v1530_v4  ;;  %188 = vperm.xlu2 %1302, %v186_v36  }
  0x11   :  { %136 = vmatmul.f32.vlgmr.msrb.gmra.mxu1 %v1422_v8  ;;  %502 = vmatpush.msrb.mxu3 %v1523_v3 }
  0x12   :  { %358 = vmatpush.msra.mxu1 %v1539_v6  ;;  %1262 = vmatmul.msk.f32.vlgmr.msra.gmra.mxu2 %vm62_vm0, %v56_v40 }
  0x13   :  { %503 = vmatpush.msrb.mxu3 %v1530_v4  ;;  %429 = vmatpush.msra.mxu2 %v1523_v3 }
  0x14   :  { %359 = vmatpush.msra.mxu1 %v1548_v7 }
  0x15   :  { %504 = vmatpush.msrb.mxu3 %v1539_v6  ;;  %430 = vmatpush.msra.mxu2 %v1530_v4 }
  0x16   :  { %575 = vmatpush.msrb.mxu1 %v1523_v3 }
  0x17   :  { %505 = vmatpush.msrb.mxu3 %v1548_v7  ;;  %431 = vmatpush.msra.mxu2 %v1539_v6 }
  0x18   :  { %576 = vmatpush.msrb.mxu1 %v1530_v4 }
  0x19   :  { %432 = vmatpush.msra.mxu2 %v1548_v7 }
  0x1a   :  { %577 = vmatpush.msrb.mxu1 %v1539_v6 }
  0x1c   :  { %578 = vmatpush.msrb.mxu1 %v1548_v7 }
  0x6a   :  { %v189_v42 = vpop.permute.xlu2 %188 }
  0x6b   :  { %vm190_vm7 = vcmp.eq.s32.totalorder %v189_v42, 1 }
  0x76   :  { %v1579_v14 = vpop.permute.xlu0 %162 }
  0x86   :  { %v92_v10 = vpop.f32.mrf.mxu0  ;;  %v98_v11 = vpop.f32.mrf.mxu1 }
  0x87   :  { %v93_v12 = vadd.f32 %v1573_v9, %v92_v10  ;;  %v99_v13 = vadd.f32 %v1573_v9, %v98_v11 }
  0x89   :  { %105 = vst.msk [vmem:[#allocation2] sm:$0xff] %vm104_vm1, %v93_v12  ;;  %v54_v12 = vld [vmem:[%s1843_s25 + $0x8] sm:$0xff] }
  0x8a   :  { %107 = vst.msk [vmem:[#allocation2 + $0x10] sm:$0xff] %vm104_vm1, %v99_v13  ;;  %1260 = vmatmul.msk.f32.gmra.mxu0 %vm62_vm0, %v54_v12 }
  0x8e   :  { %v137_v15 = vpop.f32.mrf.mxu1 }
  0x8f   :  { %v165_v16 = vadd.f32 %v1579_v14, %v137_v15 }
  0x90   :  { %v115_v17 = vld [vmem:[#allocation2] sm:$0xf]  ;;  %v192_v53 = vld [vmem:[#allocation2 + $0x4] sm:$0xf] }
  0x91   :  { %167 = vrot.lane.b32.xlu0 %v165_v16, %s1421_s20  ;;  %v140_v18 = vadd.f32 %v137_v15, %v115_v17 }
  0x93   :  { %v1263_v19 = vmul.f32 -1.442695, %v140_v18 }
  0x95   :  { %1311 = vpow2.f32 %v1263_v19  ;;  %v101_v49 = vpop.f32.mrf.mxu2 }
  0x96   :  { %v102_v50 = vadd.f32 %v1573_v9, %v101_v49 }
  0x98   :  { %108 = vst.msk [vmem:[#allocation2 + $0x18] sm:$0xff] %vm104_vm1, %v102_v50 }
  0x9b   :  { %v1312_v20 = vpop.eup %1311 }
  0x9c   :  { %v144_v21 = vadd.f32 1.0, %v1312_v20 }
  0x9e   :  { %1313 = vrcp.f32 %v144_v21  ;;  %v156_v27 = vand.u32 2147483648, %v144_v21  ;;  %vm150_vm3 = vweird.f32 %v144_v21  ;;  %v154_v28 = vand.u32 2147483647, %v144_v21 }
  0xa0   :  { %v157_v30 = vor.u32 1.1754944e-38, %v156_v27  ;;  %vm155_vm5 = vcmp.eq.f32.partialorder %v154_v28, 8.507059e+37 }
  0xa4   :  { %v1314_v22 = vpop.eup %1313 }
  0xa5   :  { %v146_v23 = vmul.f32 %v1314_v22, %v144_v21  ;;  %vm151_vm2 = vweird.f32 %v1314_v22 }
  0xa6   :  { %vm152_vm4 = vmor %vm150_vm3, %vm151_vm2 }
  0xa7   :  { %v147_v24 = vsub.f32 1.0, %v146_v23 }
  0xa9   :  { %v148_v25 = vmul.f32 %v1314_v22, %v147_v24 }
  0xab   :  { %v149_v26 = vadd.f32 %v1314_v22, %v148_v25 }
  0xad   :  { %v153_v29 = vsel %vm152_vm4, %v1314_v22, %v149_v26 }
  0xae   :  { %v158_v32 = vsel %vm155_vm5, %v157_v30, %v153_v29 }
  0xaf   :  { %v177_v41 = vsub.f32 1.0, %v158_v32  ;;  %v183_v44 = vmul.f32 0.0, %v158_v32 }
 0x103   :  { %v168_v31 = vpop.permute.xlu0 %167 }
 0x104   :  { %v170_v33 = vmul.f32 %v168_v31, %v158_v32 }
 0x106   :  { %172 = vrot.lane.b32.xlu1 %v170_v33, %s1421_s20 }
 0x107   :  { %v95_v21 = vpop.f32.mrf.mxu0 }
 0x108   :  { %v96_v22 = vadd.f32 %v1573_v9, %v95_v21 }
 0x10a   :  { %106 = vst.msk [vmem:[#allocation2 + $0x8] sm:$0xff] %vm104_vm1, %v96_v22 }
 0x111   :  { %v265_v26 = vld [vmem:[#allocation2 + $0x8] sm:$0xf] }
 0x178   :  { %v173_v37 = vpop.permute.xlu1 %172 }
 0x179   :  { %v175_v38 = vadd.f32 %v173_v37, %v115_v17 }
 0x17b   :  { %1315 = vtanh.f32 %v175_v38 }
 0x181   :  { %v1316_v39 = vpop.eup %1315 }
 0x182   :  { %179 = vrot.lane.b32.xlu1 %v1316_v39, %s1424_s24 }
 0x1f4   :  { %v180_v43 = vpop.permute.xlu1 %179 }
 0x1f5   :  { %v182_v45 = vmul.f32 %v180_v43, %v177_v41 }
 0x1f7   :  { %v184_v46 = vadd.f32 %v183_v44, %v182_v45 }
 0x1f9   :  { %v191_v47 = vsel %vm190_vm7, %v184_v46, 0.0 }
 0x1fa   :  { %194 = vrot.lane.b32.xlu2 %v191_v47, %s1424_s24 }
 0x254   :  { %v195_v48 = vpop.permute.xlu2 %194 }
 0x255   :  { %1264 = vmatmul.msk.f32.vlgmr.msrb.gmra.mxu2 %vm116_vm8, %v195_v48 }
 0x256   :  { %648 = vmatpush.msrb.mxu2 %v1523_v3 }
 0x258   :  { %649 = vmatpush.msrb.mxu2 %v1530_v4 }
 0x25a   :  { %650 = vmatpush.msrb.mxu2 %v1539_v6 }
 0x25c   :  { %651 = vmatpush.msrb.mxu2 %v1548_v7 }
 0x2d8   :  { %v215_v51 = vpop.f32.mrf.mxu2 }
 0x2d9   :  { %v238_v52 = vadd.f32 %v215_v51, %v1579_v14  ;;  %v218_v54 = vadd.f32 %v215_v51, %v192_v53 }
 0x2db   :  { %240 = vrot.lane.b32.xlu0 %v238_v52, %s1421_s20  ;;  %v1265_v55 = vmul.f32 -1.442695, %v218_v54 }
 0x2dd   :  { %1317 = vpow2.f32 %v1265_v55 }
 0x2e3   :  { %v1318_v56 = vpop.eup %1317  ;;  %261 = vperm.xlu0 %1303, %v259_v58   ;;  %v338_v58 = vld [vmem:[#allocation2 + $0xc] sm:$0xf] }
 0x2e4   :  { %v222_v57 = vadd.f32 1.0, %v1318_v56 }
 0x2e6   :  { %1319 = vrcp.f32 %v222_v57  ;;  %v234_v1 = vand.u32 2147483648, %v222_v57  ;;  %vm228_vm12 = vweird.f32 %v222_v57  ;;  %v232_v2 = vand.u32 2147483647, %v222_v57 }
 0x2e8   :  { %v235_v4 = vor.u32 1.1754944e-38, %v234_v1  ;;  %vm233_vm14 = vcmp.eq.f32.partialorder %v232_v2, 8.507059e+37 }
 0x2eb   :  { %334 = vperm.xlu0 %1303, %v332_v60  }
 0x2ec   :  { %v1320_v59 = vpop.eup %1319 }
 0x2ed   :  { %v224_v61 = vmul.f32 %v1320_v59, %v222_v57  ;;  %vm229_vm11 = vweird.f32 %v1320_v59  ;;  %v405_v57 = vsel %vm404_vm6, 1, %v1423_v35 }
 0x2ee   :  { %vm230_vm13 = vmor %vm228_vm12, %vm229_vm11 }
 0x2ef   :  { %v225_v62 = vsub.f32 1.0, %v224_v61 }
 0x2f1   :  { %v226_v63 = vmul.f32 %v1320_v59, %v225_v62 }
 0x2f3   :  { %v227_v0 = vadd.f32 %v1320_v59, %v226_v63 }
 0x2f5   :  { %v231_v3 = vsel %vm230_vm13, %v1320_v59, %v227_v0 }
 0x2f6   :  { %v236_v6 = vsel %vm233_vm14, %v235_v4, %v231_v3 }
 0x2f7   :  { %v250_v13 = vsub.f32 1.0, %v236_v6  ;;  %v256_v17 = vmul.f32 %v236_v6, %v191_v47 }
 0x34d   :  { %v241_v5 = vpop.permute.xlu0 %240 }
 0x34e   :  { %v243_v7 = vmul.f32 %v241_v5, %v236_v6 }
 0x350   :  { %245 = vrot.lane.b32.xlu1 %v243_v7, %s1421_s20 }
 0x355   :  { %v262_v16 = vpop.permute.xlu0 %261 }
 0x356   :  { %vm263_vm15 = vcmp.eq.s32.totalorder %v262_v16, 1 }
 0x35d   :  { %v335_v49 = vpop.permute.xlu0 %334 }
 0x35e   :  { %vm336_vm5 = vcmp.eq.s32.totalorder %v335_v49, 1 }
 0x3c2   :  { %v246_v8 = vpop.permute.xlu1 %245 }
 0x3c3   :  { %v248_v10 = vadd.f32 %v246_v8, %v192_v53 }
 0x3c5   :  { %1321 = vtanh.f32 %v248_v10 }
 0x3cb   :  { %v1322_v11 = vpop.eup %1321 }
 0x3cc   :  { %252 = vrot.lane.b32.xlu2 %v1322_v11, %s1424_s24 }
 0x426   :  { %v253_v15 = vpop.permute.xlu2 %252 }
 0x427   :  { %v255_v18 = vmul.f32 %v253_v15, %v250_v13 }
 0x429   :  { %v257_v19 = vadd.f32 %v256_v17, %v255_v18 }
 0x42b   :  { %v264_v20 = vsel %vm263_vm15, %v257_v19, %v191_v47 }
 0x42c   :  { %267 = vrot.lane.b32.xlu1 %v264_v20, %s1424_s24 }
 0x49e   :  { %v268_v23 = vpop.permute.xlu1 %267 }
 0x49f   :  { %1266 = vmatmul.msk.f32.vlgmr.msra.gmra.mxu3 %vm116_vm8, %v268_v23 }
 0x522   :  { %v288_v24 = vpop.f32.mrf.mxu3 }
 0x523   :  { %v311_v25 = vadd.f32 %v288_v24, %v1579_v14  ;;  %v291_v27 = vadd.f32 %v288_v24, %v265_v26 }
 0x525   :  { %313 = vrot.lane.b32.xlu2 %v311_v25, %s1421_s20  ;;  %v1267_v28 = vmul.f32 -1.442695, %v291_v27 }
 0x527   :  { %1323 = vpow2.f32 %v1267_v28 }
 0x52d   :  { %v1324_v29 = vpop.eup %1323 }
 0x52e   :  { %v295_v30 = vadd.f32 1.0, %v1324_v29 }
 0x530   :  { %1325 = vrcp.f32 %v295_v30  ;;  %v307_v37 = vand.u32 2147483648, %v295_v30  ;;  %vm301_vm2 = vweird.f32 %v295_v30  ;;  %v305_v38 = vand.u32 2147483647, %v295_v30 }
 0x532   :  { %v308_v40 = vor.u32 1.1754944e-38, %v307_v37  ;;  %vm306_vm4 = vcmp.eq.f32.partialorder %v305_v38, 8.507059e+37 }
 0x536   :  { %v1326_v31 = vpop.eup %1325 }
 0x537   :  { %v297_v32 = vmul.f32 %v1326_v31, %v295_v30  ;;  %vm302_vm1 = vweird.f32 %v1326_v31 }
 0x538   :  { %vm303_vm3 = vmor %vm301_vm2, %vm302_vm1  ;;  %vm477_vm2 = vcmp.gt.s32.totalorder %v1587_v34, 4 }
 0x539   :  { %v298_v9 = vsub.f32 1.0, %v297_v32 }
 0x53b   :  { %v299_v33 = vmul.f32 %v1326_v31, %v298_v9 }
 0x53d   :  { %v300_v36 = vadd.f32 %v1326_v31, %v299_v33 }
 0x53f   :  { %v304_v39 = vsel %vm303_vm3, %v1326_v31, %v300_v36 }
 0x540   :  { %v309_v42 = vsel %vm306_vm4, %v308_v40, %v304_v39  ;;  %vm550_vm4 = vcmp.gt.s32.totalorder %v1587_v34, 5 }
 0x541   :  { %v323_v47 = vsub.f32 1.0, %v309_v42  ;;  %v329_v50 = vmul.f32 %v309_v42, %v264_v20 }
 0x57f   :  { %v314_v41 = vpop.permute.xlu2 %313 }
 0x580   :  { %v316_v43 = vmul.f32 %v314_v41, %v309_v42 }
 0x582   :  { %318 = vrot.lane.b32.xlu1 %v316_v43, %s1421_s20 }
 0x5f4   :  { %v319_v44 = vpop.permute.xlu1 %318 }
 0x5f5   :  { %v321_v45 = vadd.f32 %v319_v44, %v265_v26  ;;  %v411_v26 = vld [vmem:[#allocation2 + $0x10] sm:$0xf]  ;;  %v478_v44 = vsel %vm477_vm2, 1, %v1423_v35  ;;  %vm696_vm2 = vcmp.gt.s32.totalorder %v1587_v34, 7 }
 0x5f7   :  { %1327 = vtanh.f32 %v321_v45 }
 0x5fd   :  { %v1328_v46 = vpop.eup %1327 }
 0x5fe   :  { %325 = vrot.lane.b32.xlu2 %v1328_v46, %s1424_s24 }
 0x658   :  { %v326_v48 = vpop.permute.xlu2 %325 }
 0x659   :  { %v328_v51 = vmul.f32 %v326_v48, %v323_v47 }
 0x65b   :  { %v330_v52 = vadd.f32 %v329_v50, %v328_v51 }
 0x65d   :  { %v337_v53 = vsel %vm336_vm5, %v330_v52, %v264_v20 }
 0x65e   :  { %340 = vrot.lane.b32.xlu1 %v337_v53, %s1424_s24 }
 0x6d0   :  { %v341_v54 = vpop.permute.xlu1 %340 }
 0x6d1   :  { %1268 = vmatmul.msk.f32.vlgmr.msra.gmra.mxu1 %vm116_vm8, %v341_v54 }
 0x74e   :  { %v361_v55 = vpop.f32.mrf.mxu1 }
 0x74f   :  { %v384_v56 = vadd.f32 %v361_v55, %v1579_v14  ;;  %v364_v59 = vadd.f32 %v361_v55, %v338_v58 }
 0x751   :  { %386 = vrot.lane.b32.xlu2 %v384_v56, %s1421_s20  ;;  %v1269_v60 = vmul.f32 -1.442695, %v364_v59  ;;  %v484_v59 = vld [vmem:[#allocation2 + $0x14] sm:$0xf] }
 0x753   :  { %1329 = vpow2.f32 %v1269_v60 }
 0x759   :  { %407 = vperm.xlu2 %1302, %v405_v57   ;;  %v1330_v61 = vpop.eup %1329 }
 0x75a   :  { %v368_v62 = vadd.f32 1.0, %v1330_v61 }
 0x75c   :  { %1331 = vrcp.f32 %v368_v62  ;;  %v380_v4 = vand.u32 2147483648, %v368_v62  ;;  %vm374_vm9 = vweird.f32 %v368_v62  ;;  %v378_v5 = vand.u32 2147483647, %v368_v62 }
 0x75e   :  { %v381_v7 = vor.u32 1.1754944e-38, %v380_v4  ;;  %vm379_vm11 = vcmp.eq.f32.partialorder %v378_v5, 8.507059e+37 }
 0x762   :  { %v1332_v63 = vpop.eup %1331 }
 0x763   :  { %v370_v0 = vmul.f32 %v1332_v63, %v368_v62  ;;  %vm375_vm7 = vweird.f32 %v1332_v63 }
 0x764   :  { %vm376_vm10 = vmor %vm374_vm9, %vm375_vm7 }
 0x765   :  { %v371_v1 = vsub.f32 1.0, %v370_v0 }
 0x767   :  { %v372_v2 = vmul.f32 %v1332_v63, %v371_v1 }
 0x769   :  { %v373_v3 = vadd.f32 %v1332_v63, %v372_v2 }
 0x76b   :  { %v377_v6 = vsel %vm376_vm10, %v1332_v63, %v373_v3 }
 0x76c   :  { %v382_v10 = vsel %vm379_vm11, %v381_v7, %v377_v6  ;;  %vm623_vm11 = vcmp.gt.s32.totalorder %v1587_v34, 6 }
 0x76d   :  { %v396_v16 = vsub.f32 1.0, %v382_v10  ;;  %v402_v19 = vmul.f32 %v382_v10, %v337_v53 }
 0x7ab   :  { %v387_v8 = vpop.permute.xlu2 %386 }
 0x7ac   :  { %v389_v11 = vmul.f32 %v387_v8, %v382_v10 }
 0x7ae   :  { %391 = vrot.lane.b32.xlu0 %v389_v11, %s1421_s20 }
 0x7b3   :  { %v408_v18 = vpop.permute.xlu2 %407 }
 0x7b4   :  { %vm409_vm12 = vcmp.eq.s32.totalorder %v408_v18, 1 }
 0x820   :  { %v392_v12 = vpop.permute.xlu0 %391 }
 0x821   :  { %v394_v13 = vadd.f32 %v392_v12, %v338_v58  ;;  %v551_v58 = vsel %vm550_vm4, 1, %v1423_v35 }
 0x823   :  { %1333 = vtanh.f32 %v394_v13 }
 0x829   :  { %v1334_v15 = vpop.eup %1333 }
 0x82a   :  { %398 = vrot.lane.b32.xlu1 %v1334_v15, %s1424_s24 }
 0x89c   :  { %v399_v17 = vpop.permute.xlu1 %398 }
 0x89d   :  { %v401_v20 = vmul.f32 %v399_v17, %v396_v16 }
 0x89f   :  { %v403_v21 = vadd.f32 %v402_v19, %v401_v20 }
 0x8a1   :  { %v410_v22 = vsel %vm409_vm12, %v403_v21, %v337_v53 }
 0x8a2   :  { %413 = vrot.lane.b32.xlu0 %v410_v22, %s1424_s24 }
 0x914   :  { %v414_v23 = vpop.permute.xlu0 %413 }
 0x915   :  { %1270 = vmatmul.msk.f32.vlgmr.msra.gmra.mxu2 %vm116_vm8, %v414_v23 }
 0x998   :  { %v434_v24 = vpop.f32.mrf.mxu2 }
 0x999   :  { %v457_v25 = vadd.f32 %v434_v24, %v1579_v14  ;;  %v437_v27 = vadd.f32 %v434_v24, %v411_v26 }
 0x99b   :  { %459 = vrot.lane.b32.xlu1 %v457_v25, %s1421_s20  ;;  %v1271_v28 = vmul.f32 -1.442695, %v437_v27  ;;  %v624_v27 = vsel %vm623_vm11, 1, %v1423_v35 }
 0x99d   :  { %1335 = vpow2.f32 %v1271_v28  ;;  %v557_v28 = vld [vmem:[#allocation2 + $0x18] sm:$0xf] }
 0x9a3   :  { %v1336_v29 = vpop.eup %1335  ;;  %480 = vperm.xlu1 %1304, %v478_v44  }
 0x9a4   :  { %v441_v30 = vadd.f32 1.0, %v1336_v29 }
 0x9a6   :  { %1337 = vrcp.f32 %v441_v30  ;;  %v453_v37 = vand.u32 2147483648, %v441_v30  ;;  %vm447_vm14 = vweird.f32 %v441_v30  ;;  %v451_v38 = vand.u32 2147483647, %v441_v30 }
 0x9a8   :  { %v454_v40 = vor.u32 1.1754944e-38, %v453_v37  ;;  %vm452_vm1 = vcmp.eq.f32.partialorder %v451_v38, 8.507059e+37 }
 0x9ac   :  { %v1338_v31 = vpop.eup %1337 }
 0x9ad   :  { %v443_v32 = vmul.f32 %v1338_v31, %v441_v30  ;;  %vm448_vm13 = vweird.f32 %v1338_v31 }
 0x9ae   :  { %vm449_vm15 = vmor %vm447_vm14, %vm448_vm13 }
 0x9af   :  { %v444_v9 = vsub.f32 1.0, %v443_v32 }
 0x9b1   :  { %v445_v33 = vmul.f32 %v1338_v31, %v444_v9 }
 0x9b3   :  { %v446_v36 = vadd.f32 %v1338_v31, %v445_v33 }
 0x9b5   :  { %v450_v39 = vsel %vm449_vm15, %v1338_v31, %v446_v36 }
 0x9b6   :  { %v455_v42 = vsel %vm452_vm1, %v454_v40, %v450_v39 }
 0x9b7   :  { %v469_v48 = vsub.f32 1.0, %v455_v42  ;;  %v475_v51 = vmul.f32 %v455_v42, %v410_v22 }
 0xa0d   :  { %v460_v41 = vpop.permute.xlu1 %459 }
 0xa0e   :  { %v462_v43 = vmul.f32 %v460_v41, %v455_v42 }
 0xa10   :  { %464 = vrot.lane.b32.xlu2 %v462_v43, %s1421_s20 }
 0xa15   :  { %v481_v49 = vpop.permute.xlu1 %480 }
 0xa16   :  { %vm482_vm3 = vcmp.eq.s32.totalorder %v481_v49, 1 }
 0xa6a   :  { %v465_v45 = vpop.permute.xlu2 %464 }
 0xa6b   :  { %v467_v46 = vadd.f32 %v465_v45, %v411_v26 }
 0xa6d   :  { %1339 = vtanh.f32 %v467_v46 }
 0xa73   :  { %v1340_v47 = vpop.eup %1339 }
 0xa74   :  { %471 = vrot.lane.b32.xlu0 %v1340_v47, %s1424_s24 }
 0xae6   :  { %v472_v50 = vpop.permute.xlu0 %471 }
 0xae7   :  { %v474_v52 = vmul.f32 %v472_v50, %v469_v48 }
 0xae9   :  { %v476_v53 = vadd.f32 %v475_v51, %v474_v52 }
 0xaeb   :  { %v483_v54 = vsel %vm482_vm3, %v476_v53, %v410_v22 }
 0xaec   :  { %486 = vrot.lane.b32.xlu2 %v483_v54, %s1424_s24 }
 0xb46   :  { %v487_v55 = vpop.permute.xlu2 %486 }
 0xb47   :  { %1272 = vmatmul.msk.f32.vlgmr.msrb.gmra.mxu3 %vm116_vm8, %v487_v55 }
 0xbca   :  { %v507_v56 = vpop.f32.mrf.mxu3 }
 0xbcb   :  { %v530_v57 = vadd.f32 %v507_v56, %v1579_v14  ;;  %v510_v60 = vadd.f32 %v507_v56, %v484_v59 }
 0xbcd   :  { %532 = vrot.lane.b32.xlu0 %v530_v57, %s1421_s20  ;;  %v1273_v61 = vmul.f32 -1.442695, %v510_v60  ;;  %v630_v60 = vld [vmem:[#allocation2 + $0x1c] sm:$0xf] }
 0xbcf   :  { %1341 = vpow2.f32 %v1273_v61 }
 0xbd5   :  { %553 = vperm.xlu0 %1303, %v551_v58   ;;  %v1342_v62 = vpop.eup %1341 }
 0xbd6   :  { %v514_v63 = vadd.f32 1.0, %v1342_v62 }
 0xbd8   :  { %1343 = vrcp.f32 %v514_v63  ;;  %v526_v5 = vand.u32 2147483648, %v514_v63  ;;  %vm520_vm6 = vweird.f32 %v514_v63  ;;  %v524_v6 = vand.u32 2147483647, %v514_v63 }
 0xbda   :  { %v527_v8 = vor.u32 1.1754944e-38, %v526_v5  ;;  %vm525_vm9 = vcmp.eq.f32.partialorder %v524_v6, 8.507059e+37 }
 0xbde   :  { %v1344_v0 = vpop.eup %1343 }
 0xbdf   :  { %v516_v1 = vmul.f32 %v1344_v0, %v514_v63  ;;  %vm521_vm5 = vweird.f32 %v1344_v0 }
 0xbe0   :  { %vm522_vm7 = vmor %vm520_vm6, %vm521_vm5 }
 0xbe1   :  { %v517_v2 = vsub.f32 1.0, %v516_v1 }
 0xbe3   :  { %v518_v3 = vmul.f32 %v1344_v0, %v517_v2 }
 0xbe5   :  { %v519_v4 = vadd.f32 %v1344_v0, %v518_v3 }
 0xbe7   :  { %v523_v7 = vsel %vm522_vm7, %v1344_v0, %v519_v4 }
 0xbe8   :  { %v528_v11 = vsel %vm525_vm9, %v527_v8, %v523_v7  ;;  %vm749_vm9 = vcmask 130048  }
 0xbe9   :  { %v542_v17 = vsub.f32 1.0, %v528_v11  ;;  %v548_v20 = vmul.f32 %v528_v11, %v483_v54 }
 0xc3f   :  { %v533_v10 = vpop.permute.xlu0 %532 }
 0xc40   :  { %v535_v12 = vmul.f32 %v533_v10, %v528_v11  ;;  %v703_v11 = vld [vmem:[%s1826_s2] sm:$0xf] }
 0xc42   :  { %537 = vrot.lane.b32.xlu1 %v535_v12, %s1421_s20 }
 0xc47   :  { %v554_v19 = vpop.permute.xlu0 %553 }
 0xc48   :  { %vm555_vm10 = vcmp.eq.s32.totalorder %v554_v19, 1  ;;  %v712_v19 = vld [vmem:[%s1831_s7 + $0x10] sm:$0xff] }
 0xcb4   :  { %v538_v13 = vpop.permute.xlu1 %537 }
 0xcb5   :  { %v540_v15 = vadd.f32 %v538_v13, %v484_v59  ;;  %v697_v59 = vsel %vm696_vm2, 1, %v1423_v35 }
 0xcb7   :  { %1345 = vtanh.f32 %v540_v15 }
 0xcbd   :  { %v1346_v16 = vpop.eup %1345 }
 0xcbe   :  { %544 = vrot.lane.b32.xlu2 %v1346_v16, %s1424_s24  ;;  %v776_v16 = vld [vmem:[%s1834_s10 + $0x18] sm:$0xff] }
 0xcbf   :  { %795 = vmatpush.msra.mxu2 %v776_v16  ;;  %935 = vmatpush.msrb.mxu0 %v776_v16 }
 0xd18   :  { %v545_v18 = vpop.permute.xlu2 %544 }
 0xd19   :  { %v547_v21 = vmul.f32 %v545_v18, %v542_v17  ;;  %v713_v17 = vld [vmem:[%s1831_s7 + $0x18] sm:$0xff]  ;;  %v775_v18 = vld [vmem:[%s1834_s10 + $0x10] sm:$0xff] }
 0xd1a   :  { %735 = vmatpush.msra.mxu3 %v713_v17  ;;  %796 = vmatpush.msra.mxu2 %v775_v18 }
 0xd1b   :  { %v549_v22 = vadd.f32 %v548_v20, %v547_v21  ;;  %v774_v20 = vld [vmem:[%s1834_s10 + $0x8] sm:$0xff]  ;;  %936 = vmatpush.msrb.mxu0 %v775_v18 }
 0xd1c   :  { %v711_v21 = vld [vmem:[%s1831_s7 + $0x8] sm:$0xff]  ;;  %736 = vmatpush.msra.mxu3 %v712_v19  ;;  %797 = vmatpush.msra.mxu2 %v774_v20 }
 0xd1d   :  { %v556_v23 = vsel %vm555_vm10, %v549_v22, %v483_v54  ;;  %v773_v22 = vld [vmem:[%s1834_s10] sm:$0xff]  ;;  %937 = vmatpush.msrb.mxu0 %v774_v20 }
 0xd1e   :  { %559 = vrot.lane.b32.xlu1 %v556_v23, %s1424_s24  ;;  %737 = vmatpush.msra.mxu3 %v711_v21 }
 0xd1f   :  { %798 = vmatpush.msra.mxu2 %v773_v22  ;;  %938 = vmatpush.msrb.mxu0 %v773_v22 }
 0xd90   :  { %v560_v24 = vpop.permute.xlu1 %559 }
 0xd91   :  { %1274 = vmatmul.msk.f32.vlgmr.msrb.gmra.mxu1 %vm116_vm8, %v560_v24 }
 0xe0e   :  { %v580_v25 = vpop.f32.mrf.mxu1 }
 0xe0f   :  { %v603_v26 = vadd.f32 %v580_v25, %v1579_v14  ;;  %v583_v29 = vadd.f32 %v580_v25, %v557_v28 }
 0xe11   :  { %605 = vrot.lane.b32.xlu2 %v603_v26, %s1421_s20  ;;  %v1275_v30 = vmul.f32 -1.442695, %v583_v29 }
 0xe13   :  { %1347 = vpow2.f32 %v1275_v30 }
 0xe19   :  { %626 = vperm.xlu2 %1302, %v624_v27   ;;  %v1348_v31 = vpop.eup %1347 }
 0xe1a   :  { %v587_v32 = vadd.f32 1.0, %v1348_v31 }
 0xe1c   :  { %1349 = vrcp.f32 %v587_v32  ;;  %v599_v39 = vand.u32 2147483648, %v587_v32  ;;  %vm593_vm13 = vweird.f32 %v587_v32  ;;  %v597_v40 = vand.u32 2147483647, %v587_v32 }
 0xe1e   :  { %v600_v42 = vor.u32 1.1754944e-38, %v599_v39  ;;  %vm598_vm15 = vcmp.eq.f32.partialorder %v597_v40, 8.507059e+37  ;;  %v1308_v40 = vld [vmem:[%s1832_s8] ss:$0 sm:$0xff] }
 0xe22   :  { %v1350_v9 = vpop.eup %1349 }
 0xe23   :  { %v589_v33 = vmul.f32 %v1350_v9, %v587_v32  ;;  %vm594_vm12 = vweird.f32 %v1350_v9  ;;  %v710_v32 = vld [vmem:[%s1831_s7] sm:$0xff] }
 0xe24   :  { %vm595_vm14 = vmor %vm593_vm13, %vm594_vm12  ;;  %738 = vmatpush.msra.mxu3 %v710_v32 }
 0xe25   :  { %v590_v36 = vsub.f32 1.0, %v589_v33  ;;  %v744_v33 = vld [vmem:[%s1833_s9 + $0x8] sm:$0xff] }
 0xe26   :  { %868 = vmatpush.msrb.mxu3 %v776_v16  ;;  %767 = vmatpush.msra.mxu1 %v744_v33  ;;  %v1196_v33 = vld [vmem:[%s1837_s13 + $0x18] sm:$0xff] }
 0xe27   :  { %v591_v37 = vmul.f32 %v1350_v9, %v590_v36  ;;  %1222 = vmatpush.msra.mxu0 %v1196_v33 }
 0xe28   :  { %869 = vmatpush.msrb.mxu3 %v775_v18 }
 0xe29   :  { %v592_v38 = vadd.f32 %v1350_v9, %v591_v37 }
 0xe2a   :  { %870 = vmatpush.msrb.mxu3 %v774_v20 }
 0xe2b   :  { %v596_v41 = vsel %vm595_vm14, %v1350_v9, %v592_v38  ;;  %v1307_v9 = vld [vmem:[%s1836_s12] ss:$0 sm:$0xff]  ;;  %vm852_vm14 = vcmask 257024  }
 0xe2c   :  { %v601_v44 = vsel %vm598_vm15, %v600_v42, %v596_v41  ;;  %871 = vmatpush.msrb.mxu3 %v773_v22  ;;  %v743_v38 = vld [vmem:[%s1833_s9] sm:$0xff] }
 0xe2d   :  { %v615_v49 = vsub.f32 1.0, %v601_v44  ;;  %v621_v52 = vmul.f32 %v601_v44, %v556_v23  ;;  %768 = vmatpush.msra.mxu1 %v743_v38  ;;  %v1193_v38 = vld [vmem:[%s1837_s13] sm:$0xff] }
 0xe2f   :  { %1002 = vmatpush.msrb.mxu1 %v776_v16 }
 0xe31   :  { %1003 = vmatpush.msrb.mxu1 %v775_v18 }
 0xe33   :  { %1004 = vmatpush.msrb.mxu1 %v774_v20 }
 0xe35   :  { %1005 = vmatpush.msrb.mxu1 %v773_v22 }
 0xe6b   :  { %v606_v43 = vpop.permute.xlu2 %605 }
 0xe6c   :  { %v608_v45 = vmul.f32 %v606_v43, %v601_v44 }
 0xe6e   :  { %610 = vrot.lane.b32.xlu0 %v608_v45, %s1421_s20  ;;  %v1309_v45 = vld [vmem:[%s1835_s11] ss:$0 sm:$0xff] }
 0xe73   :  { %v627_v51 = vpop.permute.xlu2 %626 }
 0xe74   :  { %vm628_vm1 = vcmp.eq.s32.totalorder %v627_v51, 1 }
 0xee0   :  { %v611_v46 = vpop.permute.xlu0 %610 }
 0xee1   :  { %v613_v47 = vadd.f32 %v611_v46, %v557_v28 }
 0xee3   :  { %1351 = vtanh.f32 %v613_v47 }
 0xee9   :  { %v1352_v48 = vpop.eup %1351 }
 0xeea   :  { %617 = vrot.lane.b32.xlu1 %v1352_v48, %s1424_s24 }
 0xf5c   :  { %v618_v50 = vpop.permute.xlu1 %617 }
 0xf5d   :  { %v620_v53 = vmul.f32 %v618_v50, %v615_v49 }
 0xf5f   :  { %v622_v54 = vadd.f32 %v621_v52, %v620_v53 }
 0xf61   :  { %v1663_v55 = vsel %vm628_vm1, %v622_v54, %v556_v23 }
 0xf62   :  { %632 = vrot.lane.b32.xlu0 %v1663_v55, %s1424_s24 }
 0xfd4   :  { %v633_v56 = vpop.permute.xlu0 %632 }
 0xfd5   :  { %1276 = vmatmul.msk.f32.vlgmr.msrb.gmra.mxu2 %vm116_vm8, %v633_v56 }
 0xfd6   :  { %1069 = vmatpush.msrb.mxu2 %v776_v16 }
 0xfd8   :  { %1070 = vmatpush.msrb.mxu2 %v775_v18 }
 0xfda   :  { %1071 = vmatpush.msrb.mxu2 %v774_v20 }
 0xfdc   :  { %1072 = vmatpush.msrb.mxu2 %v773_v22 }
0x1058   :  { %v653_v57 = vpop.f32.mrf.mxu2 }
0x1059   :  { %v676_v58 = vadd.f32 %v653_v57, %v1579_v14  ;;  %v656_v61 = vadd.f32 %v653_v57, %v630_v60 }
0x105b   :  { %678 = vrot.lane.b32.xlu1 %v676_v58, %s1421_s20  ;;  %v1277_v62 = vmul.f32 -1.442695, %v656_v61 }
0x105d   :  { %1353 = vpow2.f32 %v1277_v62 }
0x1063   :  { %699 = vperm.xlu1 %1304, %v697_v59   ;;  %v1354_v63 = vpop.eup %1353 }
0x1064   :  { %v660_v0 = vadd.f32 1.0, %v1354_v63 }
0x1066   :  { %1355 = vrcp.f32 %v660_v0  ;;  %v672_v14 = vand.u32 2147483648, %v660_v0  ;;  %vm666_vm4 = vweird.f32 %v660_v0  ;;  %v670_v6 = vand.u32 2147483647, %v660_v0 }
0x1068   :  { %v673_v35 = vor.u32 1.1754944e-38, %v672_v14  ;;  %vm671_vm6 = vcmp.eq.f32.partialorder %v670_v6, 8.507059e+37 }
0x106c   :  { %v1356_v1 = vpop.eup %1355 }
0x106d   :  { %v662_v2 = vmul.f32 %v1356_v1, %v660_v0  ;;  %vm667_vm3 = vweird.f32 %v1356_v1 }
0x106e   :  { %vm668_vm5 = vmor %vm666_vm4, %vm667_vm3 }
0x106f   :  { %v663_v3 = vsub.f32 1.0, %v662_v2 }
0x1071   :  { %v664_v4 = vmul.f32 %v1356_v1, %v663_v3 }
0x1073   :  { %v665_v5 = vadd.f32 %v1356_v1, %v664_v4 }
0x1075   :  { %v669_v34 = vsel %vm668_vm5, %v1356_v1, %v665_v5 }
0x1076   :  { %v674_v8 = vsel %vm671_vm6, %v673_v35, %v669_v34 }
0x1077   :  { %v688_v23 = vsub.f32 1.0, %v674_v8  ;;  %v694_v26 = vmul.f32 %v674_v8, %v1663_v55 }
0x10cd   :  { %v679_v7 = vpop.permute.xlu1 %678 }
0x10ce   :  { %v681_v10 = vmul.f32 %v679_v7, %v674_v8 }
0x10d0   :  { %683 = vrot.lane.b32.xlu2 %v681_v10, %s1421_s20 }
0x10d5   :  { %v700_v25 = vpop.permute.xlu1 %699 }
0x10d6   :  { %vm701_vm7 = vcmp.eq.s32.totalorder %v700_v25, 1 }
0x10d8   :  { %706 = vperm.xlu2 %1302, %v703_v11  }
0x10e0   :  { %825 = vrot.lane.b32.xlu2 %v1307_v9, %s1421_s20 }
0x112a   :  { %v684_v12 = vpop.permute.xlu2 %683 }
0x112b   :  { %v686_v13 = vadd.f32 %v684_v12, %v630_v60 }
0x112d   :  { %1357 = vtanh.f32 %v686_v13 }
0x1132   :  { %v707_v29 = vpop.permute.xlu2 %706 }
0x1133   :  { %v1358_v15 = vpop.eup %1357 }
0x1134   :  { %690 = vrot.lane.b32.xlu0 %v1358_v15, %s1424_s24 }
0x113a   :  { %v1721_v39 = vpop.permute.xlu2 %825 }
0x11a6   :  { %v691_v24 = vpop.permute.xlu0 %690 }
0x11a7   :  { %v693_v27 = vmul.f32 %v691_v24, %v688_v23 }
0x11a9   :  { %v695_v28 = vadd.f32 %v694_v26, %v693_v27 }
0x11ab   :  { %v1700_v30 = vsel %vm701_vm7, %v695_v28, %v1663_v55 }
0x11ac   :  { %779 = vrot.lane.b32.xlu1 %v1700_v30, %s1424_s24  ;;  %v709_v31 = vmul.f32 %v707_v29, %v1700_v30 }
0x11ae   :  { %719 = vrot.lane.b32.xlu0 %v709_v31, %s1424_s24 }
0x121e   :  { %v780_v36 = vpop.permute.xlu1 %779 }
0x121f   :  { %1280 = vmatmul.msk.f32.vlgmr.msra.gmra.mxu2 %vm116_vm8, %v780_v36  ;;  %v1195_v36 = vld [vmem:[%s1837_s13 + $0x10] sm:$0xff] }
0x1220   :  { %v720_v37 = vpop.permute.xlu0 %719  ;;  %1223 = vmatpush.msra.mxu0 %v1195_v36 }
0x1221   :  { %1278 = vmatmul.msk.f32.vlgmr.msra.gmra.mxu3 %vm116_vm8, %v720_v37  ;;  %v1194_v37 = vld [vmem:[%s1837_s13 + $0x8] sm:$0xff] }
0x1222   :  { %1136 = vmatpush.msra.mxu3 %v776_v16  ;;  %1224 = vmatpush.msra.mxu0 %v1194_v37 }
0x1224   :  { %1137 = vmatpush.msra.mxu3 %v775_v18  ;;  %1225 = vmatpush.msra.mxu0 %v1193_v38 }
0x1226   :  { %1138 = vmatpush.msra.mxu3 %v774_v20 }
0x1228   :  { %1139 = vmatpush.msra.mxu3 %v773_v22 }
0x12a2   :  { %v800_v41 = vpop.f32.mrf.mxu2 }
0x12a3   :  { %v828_v42 = vadd.f32 %v1721_v39, %v800_v41 }
0x12a4   :  { %v740_v43 = vpop.f32.mrf.mxu3 }
0x12a5   :  { %v741_v44 = vadd.f32 %v1308_v40, %v740_v43  ;;  %830 = vrot.lane.b32.xlu0 %v828_v42, %s1421_s20 }
0x12a7   :  { %1279 = vmatmul.msk.f32.vlgmr.msra.gmra.mxu1 %vm749_vm9, %v741_v44  ;;  %v1768_v44 = vld [vmem:[%s1838_s14] ss:$0 sm:$0xff] }
0x1317   :  { %v831_v61 = vpop.permute.xlu0 %830 }
0x1324   :  { %v770_v46 = vpop.f32.mrf.mxu1 }
0x1325   :  { %v1731_v47 = vadd.f32 %v1309_v45, %v770_v46 }
0x1327   :  { %v803_v48 = vadd.f32 %v800_v41, %v1731_v47 }
0x1329   :  { %v1281_v49 = vmul.f32 -1.442695, %v803_v48 }
0x132b   :  { %1359 = vpow2.f32 %v1281_v49 }
0x1331   :  { %v1360_v50 = vpop.eup %1359 }
0x1332   :  { %v807_v51 = vadd.f32 1.0, %v1360_v50 }
0x1334   :  { %1361 = vrcp.f32 %v807_v51  ;;  %v819_v55 = vand.u32 2147483648, %v807_v51  ;;  %v817_v57 = vand.u32 2147483647, %v807_v51  ;;  %vm813_vm11 = vweird.f32 %v807_v51 }
0x1336   :  { %v820_v59 = vor.u32 1.1754944e-38, %v819_v55  ;;  %vm818_vm13 = vcmp.eq.f32.partialorder %v817_v57, 8.507059e+37 }
0x133a   :  { %v1362_v52 = vpop.eup %1361 }
0x133b   :  { %v809_v53 = vmul.f32 %v1362_v52, %v807_v51  ;;  %vm814_vm10 = vweird.f32 %v1362_v52 }
0x133c   :  { %vm815_vm12 = vmor %vm813_vm11, %vm814_vm10 }
0x133d   :  { %v810_v54 = vsub.f32 1.0, %v809_v53 }
0x133f   :  { %v811_v56 = vmul.f32 %v1362_v52, %v810_v54 }
0x1341   :  { %v812_v58 = vadd.f32 %v1362_v52, %v811_v56 }
0x1343   :  { %v816_v60 = vsel %vm815_vm12, %v1362_v52, %v812_v58 }
0x1344   :  { %v821_v62 = vsel %vm818_vm13, %v820_v59, %v816_v60 }
0x1345   :  { %v833_v63 = vmul.f32 %v831_v61, %v821_v62  ;;  %v840_v3 = vsub.f32 1.0, %v821_v62  ;;  %v846_v5 = vmul.f32 %v821_v62, %v1700_v30 }
0x1347   :  { %835 = vrot.lane.b32.xlu1 %v833_v63, %s1421_s20 }
0x13b9   :  { %v836_v0 = vpop.permute.xlu1 %835 }
0x13ba   :  { %v838_v1 = vadd.f32 %v836_v0, %v1731_v47 }
0x13bc   :  { %1363 = vtanh.f32 %v838_v1 }
0x13c2   :  { %v1364_v2 = vpop.eup %1363 }
0x13c3   :  { %842 = vrot.lane.b32.xlu2 %v1364_v2, %s1424_s24 }
0x141d   :  { %v843_v4 = vpop.permute.xlu2 %842 }
0x141e   :  { %v845_v14 = vmul.f32 %v843_v4, %v840_v3 }
0x1420   :  { %v847_v6 = vadd.f32 %v846_v5, %v845_v14 }
0x1422   :  { %849 = vrot.lane.b32.xlu0 %v847_v6, %s1424_s24 }
0x1494   :  { %v850_v34 = vpop.permute.xlu0 %849 }
0x1495   :  { %853 = vst.msk [vmem:[#allocation3] sm:$0xf] %vm852_vm14, %v850_v34  ;;  %1282 = vmatmul.msk.f32.vlgmr.msrb.gmra.mxu3 %vm116_vm8, %v850_v34 }
0x1518   :  { %v873_v35 = vpop.f32.mrf.mxu3 }
0x1519   :  { %v896_v7 = vadd.f32 %v873_v35, %v1721_v39  ;;  %v876_v8 = vadd.f32 %v873_v35, %v1731_v47 }
0x151b   :  { %898 = vrot.lane.b32.xlu1 %v896_v7, %s1421_s20  ;;  %v1283_v10 = vmul.f32 -1.442695, %v876_v8 }
0x151d   :  { %1365 = vpow2.f32 %v1283_v10 }
0x1523   :  { %v1366_v11 = vpop.eup %1365 }
0x1524   :  { %v880_v12 = vadd.f32 1.0, %v1366_v11 }
0x1526   :  { %1367 = vrcp.f32 %v880_v12  ;;  %v892_v19 = vand.u32 2147483648, %v880_v12  ;;  %vm886_vm1 = vweird.f32 %v880_v12  ;;  %v890_v20 = vand.u32 2147483647, %v880_v12 }
0x1528   :  { %v893_v22 = vor.u32 1.1754944e-38, %v892_v19  ;;  %vm891_vm3 = vcmp.eq.f32.partialorder %v890_v20, 8.507059e+37 }
0x152c   :  { %v1368_v13 = vpop.eup %1367 }
0x152d   :  { %v882_v15 = vmul.f32 %v1368_v13, %v880_v12  ;;  %vm887_vm15 = vweird.f32 %v1368_v13 }
0x152e   :  { %vm888_vm2 = vmor %vm886_vm1, %vm887_vm15 }
0x152f   :  { %v883_v16 = vsub.f32 1.0, %v882_v15 }
0x1531   :  { %v884_v17 = vmul.f32 %v1368_v13, %v883_v16 }
0x1533   :  { %v885_v18 = vadd.f32 %v1368_v13, %v884_v17 }
0x1535   :  { %v889_v21 = vsel %vm888_vm2, %v1368_v13, %v885_v18 }
0x1536   :  { %v894_v24 = vsel %vm891_vm3, %v893_v22, %v889_v21 }
0x1537   :  { %v908_v29 = vsub.f32 1.0, %v894_v24  ;;  %v914_v31 = vmul.f32 %v894_v24, %v847_v6 }
0x158d   :  { %v899_v23 = vpop.permute.xlu1 %898 }
0x158e   :  { %v901_v25 = vmul.f32 %v899_v23, %v894_v24 }
0x1590   :  { %903 = vrot.lane.b32.xlu2 %v901_v25, %s1421_s20 }
0x15ea   :  { %v904_v26 = vpop.permute.xlu2 %903 }
0x15eb   :  { %v906_v27 = vadd.f32 %v904_v26, %v1731_v47 }
0x15ed   :  { %1369 = vtanh.f32 %v906_v27 }
0x15f3   :  { %v1370_v28 = vpop.eup %1369 }
0x15f4   :  { %910 = vrot.lane.b32.xlu0 %v1370_v28, %s1424_s24 }
0x1666   :  { %v911_v30 = vpop.permute.xlu0 %910 }
0x1667   :  { %v913_v32 = vmul.f32 %v911_v30, %v908_v29 }
0x1669   :  { %v915_v9 = vadd.f32 %v914_v31, %v913_v32 }
0x166b   :  { %917 = vrot.lane.b32.xlu1 %v915_v9, %s1424_s24 }
0x16dd   :  { %v918_v40 = vpop.permute.xlu1 %917 }
0x16de   :  { %920 = vst.msk [vmem:[#allocation3 + $0x4] sm:$0xf] %vm852_vm14, %v918_v40  ;;  %1284 = vmatmul.msk.f32.vlgmr.msrb.gmra.mxu0 %vm116_vm8, %v918_v40 }
0x16e5   :  { %v1190_v41 = vld [vmem:[#allocation3] sm:$0xff] }
0x16e6   :  { %1292 = vmatmul.msk.f32.vlgmr.msra.gmra.mxu0 %vm116_vm8, %v1190_v41 }
0x175b   :  { %v940_v42 = vpop.f32.mrf.mxu0 }
0x175c   :  { %v963_v43 = vadd.f32 %v940_v42, %v1721_v39  ;;  %v943_v48 = vadd.f32 %v940_v42, %v1731_v47 }
0x175e   :  { %965 = vrot.lane.b32.xlu2 %v963_v43, %s1421_s20  ;;  %v1285_v49 = vmul.f32 -1.442695, %v943_v48 }
0x1760   :  { %1371 = vpow2.f32 %v1285_v49 }
0x1763   :  { %v1227_v45 = vpop.f32.mrf.mxu0 }
0x1764   :  { %v1228_v46 = vadd.f32 %v1768_v44, %v1227_v45 }
0x1766   :  { %1236 = vst.msk [vmem:[%s1839_s15] sm:$0xff] %vm62_vm0, %v1228_v46  ;;  %v1372_v50 = vpop.eup %1371 }
0x1767   :  { %v947_v51 = vadd.f32 1.0, %v1372_v50 }
0x1769   :  { %1373 = vrcp.f32 %v947_v51  ;;  %v959_v57 = vand.u32 2147483648, %v947_v51  ;;  %vm953_vm5 = vweird.f32 %v947_v51  ;;  %v957_v58 = vand.u32 2147483647, %v947_v51 }
0x176b   :  { %v960_v60 = vor.u32 1.1754944e-38, %v959_v57  ;;  %vm958_vm7 = vcmp.eq.f32.partialorder %v957_v58, 8.507059e+37 }
0x176f   :  { %v1374_v52 = vpop.eup %1373 }
0x1770   :  { %v949_v53 = vmul.f32 %v1374_v52, %v947_v51  ;;  %vm954_vm4 = vweird.f32 %v1374_v52 }
0x1771   :  { %vm955_vm6 = vmor %vm953_vm5, %vm954_vm4 }
0x1772   :  { %v950_v54 = vsub.f32 1.0, %v949_v53 }
0x1774   :  { %v951_v55 = vmul.f32 %v1374_v52, %v950_v54 }
0x1776   :  { %v952_v56 = vadd.f32 %v1374_v52, %v951_v55 }
0x1778   :  { %v956_v59 = vsel %vm955_vm6, %v1374_v52, %v952_v56 }
0x1779   :  { %v961_v62 = vsel %vm958_vm7, %v960_v60, %v956_v59 }
0x177a   :  { %v975_v3 = vsub.f32 1.0, %v961_v62  ;;  %v981_v5 = vmul.f32 %v961_v62, %v915_v9 }
0x17b8   :  { %v966_v61 = vpop.permute.xlu2 %965 }
0x17b9   :  { %v968_v63 = vmul.f32 %v966_v61, %v961_v62 }
0x17bb   :  { %970 = vrot.lane.b32.xlu0 %v968_v63, %s1421_s20 }
0x182d   :  { %v971_v0 = vpop.permute.xlu0 %970 }
0x182e   :  { %v973_v1 = vadd.f32 %v971_v0, %v1731_v47 }
0x1830   :  { %1375 = vtanh.f32 %v973_v1 }
0x1836   :  { %v1376_v2 = vpop.eup %1375 }
0x1837   :  { %977 = vrot.lane.b32.xlu1 %v1376_v2, %s1424_s24 }
0x18a9   :  { %v978_v4 = vpop.permute.xlu1 %977 }
0x18aa   :  { %v980_v14 = vmul.f32 %v978_v4, %v975_v3 }
0x18ac   :  { %v982_v6 = vadd.f32 %v981_v5, %v980_v14 }
0x18ae   :  { %984 = vrot.lane.b32.xlu2 %v982_v6, %s1424_s24 }
0x1908   :  { %v985_v34 = vpop.permute.xlu2 %984 }
0x1909   :  { %987 = vst.msk [vmem:[#allocation3 + $0x8] sm:$0xf] %vm852_vm14, %v985_v34  ;;  %1286 = vmatmul.msk.f32.vlgmr.msrb.gmra.mxu1 %vm116_vm8, %v985_v34 }
0x1986   :  { %v1007_v35 = vpop.f32.mrf.mxu1 }
0x1987   :  { %v1030_v7 = vadd.f32 %v1007_v35, %v1721_v39  ;;  %v1010_v8 = vadd.f32 %v1007_v35, %v1731_v47 }
0x1989   :  { %1032 = vrot.lane.b32.xlu0 %v1030_v7, %s1421_s20  ;;  %v1287_v10 = vmul.f32 -1.442695, %v1010_v8 }
0x198b   :  { %1377 = vpow2.f32 %v1287_v10 }
0x1991   :  { %v1378_v11 = vpop.eup %1377 }
0x1992   :  { %v1014_v12 = vadd.f32 1.0, %v1378_v11 }
0x1994   :  { %1379 = vrcp.f32 %v1014_v12  ;;  %v1026_v19 = vand.u32 2147483648, %v1014_v12  ;;  %vm1020_vm10 = vweird.f32 %v1014_v12  ;;  %v1024_v20 = vand.u32 2147483647, %v1014_v12 }
0x1996   :  { %v1027_v22 = vor.u32 1.1754944e-38, %v1026_v19  ;;  %vm1025_vm12 = vcmp.eq.f32.partialorder %v1024_v20, 8.507059e+37 }
0x199a   :  { %v1380_v13 = vpop.eup %1379 }
0x199b   :  { %v1016_v15 = vmul.f32 %v1380_v13, %v1014_v12  ;;  %vm1021_vm9 = vweird.f32 %v1380_v13 }
0x199c   :  { %vm1022_vm11 = vmor %vm1020_vm10, %vm1021_vm9 }
0x199d   :  { %v1017_v16 = vsub.f32 1.0, %v1016_v15 }
0x199f   :  { %v1018_v17 = vmul.f32 %v1380_v13, %v1017_v16 }
0x19a1   :  { %v1019_v18 = vadd.f32 %v1380_v13, %v1018_v17 }
0x19a3   :  { %v1023_v21 = vsel %vm1022_vm11, %v1380_v13, %v1019_v18 }
0x19a4   :  { %v1028_v24 = vsel %vm1025_vm12, %v1027_v22, %v1023_v21 }
0x19a5   :  { %v1042_v29 = vsub.f32 1.0, %v1028_v24  ;;  %v1048_v31 = vmul.f32 %v1028_v24, %v982_v6 }
0x19fb   :  { %v1033_v23 = vpop.permute.xlu0 %1032 }
0x19fc   :  { %v1035_v25 = vmul.f32 %v1033_v23, %v1028_v24 }
0x19fe   :  { %1037 = vrot.lane.b32.xlu1 %v1035_v25, %s1421_s20 }
0x1a70   :  { %v1038_v26 = vpop.permute.xlu1 %1037 }
0x1a71   :  { %v1040_v27 = vadd.f32 %v1038_v26, %v1731_v47 }
0x1a73   :  { %1381 = vtanh.f32 %v1040_v27 }
0x1a79   :  { %v1382_v28 = vpop.eup %1381 }
0x1a7a   :  { %1044 = vrot.lane.b32.xlu2 %v1382_v28, %s1424_s24 }
0x1ad4   :  { %v1045_v30 = vpop.permute.xlu2 %1044 }
0x1ad5   :  { %v1047_v32 = vmul.f32 %v1045_v30, %v1042_v29 }
0x1ad7   :  { %v1049_v9 = vadd.f32 %v1048_v31, %v1047_v32 }
0x1ad9   :  { %1051 = vrot.lane.b32.xlu0 %v1049_v9, %s1424_s24 }
0x1b4b   :  { %v1052_v33 = vpop.permute.xlu0 %1051 }
0x1b4c   :  { %1054 = vst.msk [vmem:[#allocation3 + $0xc] sm:$0xf] %vm852_vm14, %v1052_v33  ;;  %1288 = vmatmul.msk.f32.vlgmr.msrb.gmra.mxu2 %vm116_vm8, %v1052_v33 }
0x1b53   :  { %v1191_v36 = vld [vmem:[#allocation3 + $0x8] sm:$0xff] }
0x1b54   :  { %1293 = vmatmul.msk.f32.gmra.mxu0 %vm116_vm8, %v1191_v36 }
0x1bcf   :  { %v1074_v37 = vpop.f32.mrf.mxu2 }
0x1bd0   :  { %v1097_v38 = vadd.f32 %v1074_v37, %v1721_v39  ;;  %v1077_v42 = vadd.f32 %v1074_v37, %v1731_v47 }
0x1bd1   :  { %v1230_v40 = vpop.f32.mrf.mxu0 }
0x1bd2   :  { %v1231_v41 = vadd.f32 %v1768_v44, %v1230_v40  ;;  %1099 = vrot.lane.b32.xlu1 %v1097_v38, %s1421_s20  ;;  %v1289_v43 = vmul.f32 -1.442695, %v1077_v42 }
0x1bd4   :  { %1237 = vst.msk [vmem:[%s1839_s15 + $0x8] sm:$0xff] %vm62_vm0, %v1231_v41  ;;  %1383 = vpow2.f32 %v1289_v43 }
0x1bda   :  { %v1384_v45 = vpop.eup %1383 }
0x1bdb   :  { %v1081_v46 = vadd.f32 1.0, %v1384_v45 }
0x1bdd   :  { %1385 = vrcp.f32 %v1081_v46  ;;  %v1093_v53 = vand.u32 2147483648, %v1081_v46  ;;  %vm1087_vm15 = vweird.f32 %v1081_v46  ;;  %v1091_v54 = vand.u32 2147483647, %v1081_v46 }
0x1bdf   :  { %v1094_v56 = vor.u32 1.1754944e-38, %v1093_v53  ;;  %vm1092_vm2 = vcmp.eq.f32.partialorder %v1091_v54, 8.507059e+37 }
0x1be3   :  { %v1386_v48 = vpop.eup %1385 }
0x1be4   :  { %v1083_v49 = vmul.f32 %v1386_v48, %v1081_v46  ;;  %vm1088_vm13 = vweird.f32 %v1386_v48 }
0x1be5   :  { %vm1089_vm1 = vmor %vm1087_vm15, %vm1088_vm13 }
0x1be6   :  { %v1084_v50 = vsub.f32 1.0, %v1083_v49 }
0x1be8   :  { %v1085_v51 = vmul.f32 %v1386_v48, %v1084_v50 }
0x1bea   :  { %v1086_v52 = vadd.f32 %v1386_v48, %v1085_v51 }
0x1bec   :  { %v1090_v55 = vsel %vm1089_vm1, %v1386_v48, %v1086_v52 }
0x1bed   :  { %v1095_v58 = vsel %vm1092_vm2, %v1094_v56, %v1090_v55 }
0x1bee   :  { %v1109_v63 = vsub.f32 1.0, %v1095_v58  ;;  %v1115_v1 = vmul.f32 %v1095_v58, %v1049_v9 }
0x1c44   :  { %v1100_v57 = vpop.permute.xlu1 %1099 }
0x1c45   :  { %v1102_v59 = vmul.f32 %v1100_v57, %v1095_v58 }
0x1c47   :  { %1104 = vrot.lane.b32.xlu2 %v1102_v59, %s1421_s20 }
0x1ca1   :  { %v1105_v60 = vpop.permute.xlu2 %1104 }
0x1ca2   :  { %v1107_v61 = vadd.f32 %v1105_v60, %v1731_v47 }
0x1ca4   :  { %1387 = vtanh.f32 %v1107_v61 }
0x1caa   :  { %v1388_v62 = vpop.eup %1387 }
0x1cab   :  { %1111 = vrot.lane.b32.xlu0 %v1388_v62, %s1424_s24 }
0x1d1d   :  { %v1112_v0 = vpop.permute.xlu0 %1111 }
0x1d1e   :  { %v1114_v2 = vmul.f32 %v1112_v0, %v1109_v63 }
0x1d20   :  { %v1116_v3 = vadd.f32 %v1115_v1, %v1114_v2 }
0x1d22   :  { %1118 = vrot.lane.b32.xlu1 %v1116_v3, %s1424_s24 }
0x1d94   :  { %v1119_v4 = vpop.permute.xlu1 %1118 }
0x1d95   :  { %1121 = vst.msk [vmem:[#allocation3 + $0x10] sm:$0xf] %vm852_vm14, %v1119_v4  ;;  %1290 = vmatmul.msk.f32.vlgmr.msra.gmra.mxu3 %vm116_vm8, %v1119_v4 }
0x1e18   :  { %v1141_v5 = vpop.f32.mrf.mxu3 }
0x1e19   :  { %v1164_v14 = vadd.f32 %v1141_v5, %v1721_v39  ;;  %v1144_v6 = vadd.f32 %v1141_v5, %v1731_v47 }
0x1e1b   :  { %1166 = vrot.lane.b32.xlu2 %v1164_v14, %s1421_s20  ;;  %v1291_v34 = vmul.f32 -1.442695, %v1144_v6 }
0x1e1d   :  { %1389 = vpow2.f32 %v1291_v34 }
0x1e23   :  { %v1390_v35 = vpop.eup %1389 }
0x1e24   :  { %v1148_v7 = vadd.f32 1.0, %v1390_v35 }
0x1e26   :  { %1391 = vrcp.f32 %v1148_v7  ;;  %v1160_v15 = vand.u32 2147483648, %v1148_v7  ;;  %vm1154_vm4 = vweird.f32 %v1148_v7  ;;  %v1158_v16 = vand.u32 2147483647, %v1148_v7 }
0x1e28   :  { %v1161_v17 = vor.u32 1.1754944e-38, %v1160_v15  ;;  %vm1159_vm6 = vcmp.eq.f32.partialorder %v1158_v16, 8.507059e+37 }
0x1e2c   :  { %v1392_v8 = vpop.eup %1391 }
0x1e2d   :  { %v1150_v10 = vmul.f32 %v1392_v8, %v1148_v7  ;;  %vm1155_vm3 = vweird.f32 %v1392_v8 }
0x1e2e   :  { %vm1156_vm5 = vmor %vm1154_vm4, %vm1155_vm3 }
0x1e2f   :  { %v1151_v11 = vsub.f32 1.0, %v1150_v10 }
0x1e31   :  { %v1152_v12 = vmul.f32 %v1392_v8, %v1151_v11 }
0x1e33   :  { %v1153_v13 = vadd.f32 %v1392_v8, %v1152_v12 }
0x1e35   :  { %v1157_v39 = vsel %vm1156_vm5, %v1392_v8, %v1153_v13 }
0x1e36   :  { %v1162_v19 = vsel %vm1159_vm6, %v1161_v17, %v1157_v39 }
0x1e37   :  { %v1176_v24 = vsub.f32 1.0, %v1162_v19  ;;  %v1182_v26 = vmul.f32 %v1162_v19, %v1116_v3 }
0x1e75   :  { %v1167_v18 = vpop.permute.xlu2 %1166 }
0x1e76   :  { %v1169_v20 = vmul.f32 %v1167_v18, %v1162_v19 }
0x1e78   :  { %1171 = vrot.lane.b32.xlu0 %v1169_v20, %s1421_s20  ;;  %s1425_s20 = smov [#allocation4]  }
0x1e79   :  { %s1246_s1 = sshll.u32 %s1425_s20, 4  ;;  %s1247_s1 = int_to_ptr.vmem [resolvable:$true] %s1246_s1 }
0x1eea   :  { %v1172_v21 = vpop.permute.xlu0 %1171 }
0x1eeb   :  { %v1174_v22 = vadd.f32 %v1172_v21, %v1731_v47 }
0x1eed   :  { %1393 = vtanh.f32 %v1174_v22 }
0x1ef3   :  { %v1394_v23 = vpop.eup %1393 }
0x1ef4   :  { %1178 = vrot.lane.b32.xlu1 %v1394_v23, %s1424_s24 }
0x1f66   :  { %v1179_v25 = vpop.permute.xlu1 %1178 }
0x1f67   :  { %v1181_v27 = vmul.f32 %v1179_v25, %v1176_v24 }
0x1f69   :  { %v1183_v28 = vadd.f32 %v1182_v26, %v1181_v27 }
0x1f6b   :  { %1185 = vrot.lane.b32.xlu2 %v1183_v28, %s1424_s24 }
0x1fc5   :  { %v1186_v29 = vpop.permute.xlu2 %1185 }
0x1fc6   :  { %1188 = vst.msk [vmem:[#allocation3 + $0x14] sm:$0xf] %vm852_vm14, %v1186_v29 }
0x1fc7   :  { %1189 = vst.msk [vmem:[#allocation4] sm:$0xf] %vm852_vm14, %v1186_v29 }
0x1fc8   :  { %1251 = dma.vmem_to_hbm [thread:$0]  %s1247_s1, 64, %s1249_s27, [#allocation5]  }
0x1fcd   :  { %v1192_v30 = vld [vmem:[#allocation3 + $0x10] sm:$0xff] }
0x1fce   :  { %1294 = vmatmul.msk.f32.gmra.mxu0 %vm116_vm8, %v1192_v30 }
0x204b   :  { %v1233_v47 = vpop.f32.mrf.mxu0 }
0x204c   :  { %v1234_v31 = vadd.f32 %v1768_v44, %v1233_v47 }
0x204e   :  { %1238 = vst.msk [vmem:[%s1839_s15 + $0x10] sm:$0xff] %vm62_vm0, %v1234_v31 }
0x204f   :  { %1419 = dma.done.wait [#allocation5], 64  }
0x2050   :  { %1420 = vsyncadd [#allocation5], 4294967232 }
0x2051   :  { %1258 = vsyncpa [#allocation5], 1 }

</bundles_post_ra>
